<compile_context>
chip_gen: v6e
topology: v6e:2x2x1
jax: 0.10.0
libtpu: 0.0.40
codegen_flags: <defaults>
</compile_context>

<pallas_src>
import functools

import jax
import jax.numpy as jnp
import numpy as np
from jax.experimental import pallas as pl
from jax.experimental.pallas import tpu as pltpu


# ----------------------------------------------------------------------------
# BN folding helper (eval mode, running stats)
# ----------------------------------------------------------------------------
def fold_bn(gamma, beta, mean, var, eps=1e-5):
    scale = gamma / jnp.sqrt(var + eps)
    bias = beta - mean * scale
    return scale.astype(jnp.float32), bias.astype(jnp.float32)


# ----------------------------------------------------------------------------
# Fused Block kernel: expand (+ fused conv-shortcut) matmul -> depthwise with
# VMEM halo -> project matmul (+ residual or stride subsample), all in VMEM.
# Activations live in a flat (H*W, C) pixel layout; weights contract only over
# the channel axis (dense, no kron inflation).
# ----------------------------------------------------------------------------
def _block_kernel(x_ref, w1_ref, b1_ref, w2_ref, b2_ref, w3_ref, b3_ref,
                  *rest, H, W, Cexp, Cout, k, stride, shortcut, bf16_mm):
    if stride == 1:
        o_ref, xp_ref = rest
        sel_ref = None
    else:
        sel_ref, o_ref, xp_ref = rest

    pad = k // 2
    HW = H * W
    F = pad * W + pad                       # flat offset of the interior
    f32 = jnp.float32

    # ---- stage 1: expand 1x1 conv (+ fused shortcut 1x1 conv), BN folded ---
    x = x_ref[0]                                            # (H*W, Cin) f32
    xm = x.astype(jnp.bfloat16) if bf16_mm else x
    y1 = jnp.dot(xm, w1_ref[...], preferred_element_type=f32) + b1_ref[...]
    h1 = jnp.maximum(y1[:, :Cexp], 0.0)                     # (H*W, Cexp)

    # ---- stage 2: depthwise kxk conv, SAME pad (computed at stride 1) ------
    # Only the halo border of the scratch is (re)zeroed each step; the
    # interior is fully overwritten, so no full-scratch clear is needed.
    xp_ref[pl.ds(0, F), :] = jnp.zeros((F, Cexp), f32)
    xp_ref[pl.ds(F + HW, F), :] = jnp.zeros((F, Cexp), f32)
    xp_ref[pl.ds(F, HW), :] = h1

    # W-boundary masks (flat row index mod W), hoisted out of the tap loop.
    col = jax.lax.broadcasted_iota(jnp.int32, (HW, Cexp), 0) % W
    kw_masks = []
    for kw in range(k):
        d = kw - pad
        if d < 0:
            kw_masks.append(col >= -d)
        elif d > 0:
            kw_masks.append(col < W - d)
        else:
            kw_masks.append(None)

    acc = jnp.zeros((HW, Cexp), f32)
    for kh in range(k):
        for kw in range(k):
            start = F + (kh - pad) * W + (kw - pad)
            tap = xp_ref[pl.ds(start, HW), :]               # (H*W, Cexp)
            if kw_masks[kw] is not None:
                tap = jnp.where(kw_masks[kw], tap, 0.0)
            acc = acc + tap * w2_ref[pl.ds(kh * k + kw, 1), :]
    h2 = jnp.maximum(acc + b2_ref[...], 0.0)                # (H*W, Cexp)

    # ---- stage 3: project 1x1 conv (+ residual / stride subsample) ---------
    if stride != 1:
        # Subsample the stride-1 depthwise result with an exact 0/1 selection
        # matmul (MXU) -> (Ho*Wo, Cexp); avoids gathers / strided stores.
        h2 = jnp.dot(sel_ref[...], h2, preferred_element_type=f32)
    h2m = h2.astype(jnp.bfloat16) if bf16_mm else h2
    out = jnp.dot(h2m, w3_ref[...], preferred_element_type=f32) + b3_ref[...]
    if shortcut == "identity":
        out = out + x
    elif shortcut == "conv":
        out = out + y1[:, Cexp:]
    o_ref[0] = out.astype(o_ref.dtype)


# ----------------------------------------------------------------------------
# Wrapper: BN folding, dense weight packing, BlockSpecs, VMEM budget.
# ----------------------------------------------------------------------------
def _fused_block(x_nhwc, prm, *, kernel_size, stride, in_size, expand_size,
                 out_size, bf16_matmul=False):
    N, H, W, Cin = x_nhwc.shape
    k, pad = kernel_size, kernel_size // 2
    Cexp, Cout = expand_size, out_size
    f32 = jnp.float32
    mm_dtype = jnp.bfloat16 if bf16_matmul else f32

    s1, b1 = fold_bn(prm["g1"], prm["be1"], prm["m1"], prm["v1"])
    s2, b2 = fold_bn(prm["g2"], prm["be2"], prm["m2"], prm["v2"])
    s3, b3 = fold_bn(prm["g3"], prm["be3"], prm["m3"], prm["v3"])

    # Dense channel-contraction weights (no kron / block-diagonal inflation).
    w1 = (prm["w1"] * s1[None, :]).astype(f32)              # (Cin, Cexp)
    if stride == 1 and in_size != out_size:
        shortcut = "conv"
        ssc, bsc = fold_bn(prm["gsc"], prm["besc"], prm["msc"], prm["vsc"])
        w1cat = jnp.concatenate(
            [w1, (prm["wsc"] * ssc[None, :]).astype(f32)], axis=1)
        b1cat = jnp.concatenate([b1, bsc])[None, :]
    elif stride == 1:
        shortcut = "identity"
        w1cat, b1cat = w1, b1[None, :]
    else:
        shortcut = "none"
        w1cat, b1cat = w1, b1[None, :]
    Ccat = w1cat.shape[1]

    w2f = (prm["w2"] * s2[None, None, :]).reshape(k * k, Cexp).astype(f32)
    w3f = (prm["w3"] * s3[None, :]).astype(mm_dtype)        # (Cexp, Cout)
    w1cat = w1cat.astype(mm_dtype)
    b1f = b1cat.astype(f32)
    b2f = b2[None, :].astype(f32)
    b3f = b3[None, :].astype(f32)

    HW = H * W
    F = pad * W + pad
    L = HW + 2 * F                                          # halo scratch rows
    Ho = (H + 2 * pad - k) // stride + 1
    Wo = (W + 2 * pad - k) // stride + 1

    x_rows = x_nhwc.reshape(N, HW, Cin)      # contiguous -> free reshape

    in_specs = [
        pl.BlockSpec((1, HW, Cin), lambda n: (n, 0, 0)),
        pl.BlockSpec((Cin, Ccat), lambda n: (0, 0)),
        pl.BlockSpec((1, Ccat), lambda n: (0, 0)),
        pl.BlockSpec((k * k, Cexp), lambda n: (0, 0)),
        pl.BlockSpec((1, Cexp), lambda n: (0, 0)),
        pl.BlockSpec((Cexp, Cout), lambda n: (0, 0)),
        pl.BlockSpec((1, Cout), lambda n: (0, 0)),
    ]
    args = [x_rows, w1cat, b1f, w2f, b2f, w3f, b3f]

    if stride == 1:
        M_out = HW
    else:
        M_out = Ho * Wo
        rows = (stride * jnp.arange(Ho))[:, None] * W \
            + stride * jnp.arange(Wo)[None, :]
        sel = jax.nn.one_hot(rows.reshape(-1), HW, dtype=f32)  # (Ho*Wo, H*W)
        in_specs.append(pl.BlockSpec((M_out, HW), lambda n: (0, 0)))
        args.append(sel)

    out_shape = jax.ShapeDtypeStruct((N, M_out, Cout), x_nhwc.dtype)
    out_spec = pl.BlockSpec((1, M_out, Cout), lambda n: (n, 0, 0))

    # ---- VMEM budget (tiling-padded, incl. 2x double-buffered pipeline) ----
    def padded_bytes(shape, itemsize):
        d = list(shape)
        d[-1] = -(-d[-1] // 128) * 128
        if len(d) >= 2:
            d[-2] = -(-d[-2] // 8) * 8
        return int(np.prod(d)) * itemsize

    itm = 2 if bf16_matmul else 4
    vmem_est = (
        2 * (padded_bytes((HW, Cin), 4)
             + padded_bytes((Cin, Ccat), itm) + padded_bytes((1, Ccat), 4)
             + padded_bytes((k * k, Cexp), 4) + padded_bytes((1, Cexp), 4)
             + padded_bytes((Cexp, Cout), itm) + padded_bytes((1, Cout), 4)
             + padded_bytes((M_out, Cout), 4))
        + padded_bytes((L, Cexp), 4)
        + 6 * padded_bytes((HW, max(Ccat, Cexp)), 4))
    if stride != 1:
        vmem_est += 2 * padded_bytes((M_out, HW), 4)
    if vmem_est > 24 * 2 ** 20:
        # Conservative across v5e (16 MiB scoped default) / v7x (64 MiB VMEM).
        raise ValueError("Block too large for the one-image-per-step fused "
                         "kernel; tile over output rows instead.")
    vmem_limit = int(min(max(2 * vmem_est, 16 * 2 ** 20), 56 * 2 ** 20))

    out = pl.pallas_call(
        functools.partial(_block_kernel, H=H, W=W, Cexp=Cexp, Cout=Cout, k=k,
                          stride=stride, shortcut=shortcut,
                          bf16_mm=bf16_matmul),
        out_shape=out_shape,
        grid_spec=pltpu.PrefetchScalarGridSpec(
            num_scalar_prefetch=0,
            grid=(N,),
            in_specs=in_specs,
            out_specs=out_spec,
            scratch_shapes=[pltpu.VMEM((L, Cexp), f32)],
        ),
        compiler_params=pltpu.CompilerParams(
            dimension_semantics=("parallel",),
            vmem_limit_bytes=vmem_limit),
    )(*args)

    return out.reshape(N, Ho, Wo, Cout)


# ----------------------------------------------------------------------------
# Block forward (NCHW interface, matching the PyTorch module)
# ----------------------------------------------------------------------------
def block_forward(x_nchw, params, *, kernel_size, stride, in_size, expand_size,
                  out_size, bf16_matmul=False):
    x = jnp.transpose(x_nchw, (0, 2, 3, 1))   # single boundary NCHW -> NHWC
    out = _fused_block(x, params, kernel_size=kernel_size, stride=stride,
                       in_size=in_size, expand_size=expand_size,
                       out_size=out_size, bf16_matmul=bf16_matmul)
    return jnp.transpose(out, (0, 3, 1, 2))   # NHWC -> NCHW


# ----------------------------------------------------------------------------
# Pure-JAX (lax.conv) reference in NCHW for validation
# ----------------------------------------------------------------------------
def ref_forward(x, p, *, kernel_size, stride, in_size, expand_size, out_size):
    def conv(x, w, stride=1, pad=0, groups=1):
        return jax.lax.conv_general_dilated(
            x, w, (stride, stride), [(pad, pad), (pad, pad)],
            dimension_numbers=("NCHW", "OIHW", "NCHW"),
            feature_group_count=groups,
            precision=jax.lax.Precision.HIGHEST)

    def bn(x, g, b, m, v, eps=1e-5):
        s = g / jnp.sqrt(v + eps)
        return x * s[None, :, None, None] + (b - m * s)[None, :, None, None]

    out = jnp.maximum(bn(conv(x, p["w1_oihw"]),
                         p["g1"], p["be1"], p["m1"], p["v1"]), 0.0)
    out = jnp.maximum(
        bn(conv(out, p["w2_oihw"], stride=stride, pad=kernel_size // 2,
                groups=expand_size),
           p["g2"], p["be2"], p["m2"], p["v2"]), 0.0)
    out = bn(conv(out, p["w3_oihw"]), p["g3"], p["be3"], p["m3"], p["v3"])
    if stride == 1:
        if in_size != out_size:
            sc = bn(conv(x, p["wsc_oihw"]),
                    p["gsc"], p["besc"], p["msc"], p["vsc"])
        else:
            sc = x
        out = out + sc
    return out


# ----------------------------------------------------------------------------
def make_params(key, *, kernel_size, in_size, expand_size, out_size):
    ks = jax.random.split(key, 24)
    f32 = jnp.float32

    def bn_params(k0, k1, k2, k3, c):
        return (1.0 + 0.1 * jax.random.normal(k0, (c,), f32),      # gamma
                0.1 * jax.random.normal(k1, (c,), f32),             # beta
                0.1 * jax.random.normal(k2, (c,), f32),             # running_mean
                0.5 + jax.random.uniform(k3, (c,), f32))            # running_var

    w1_oihw = 0.2 * jax.random.normal(ks[0], (expand_size, in_size, 1, 1), f32)
    w2_oihw = 0.2 * jax.random.normal(
        ks[1], (expand_size, 1, kernel_size, kernel_size), f32)
    w3_oihw = 0.2 * jax.random.normal(ks[2], (out_size, expand_size, 1, 1), f32)
    wsc_oihw = 0.2 * jax.random.normal(ks[3], (out_size, in_size, 1, 1), f32)

    g1, be1, m1, v1 = bn_params(ks[4], ks[5], ks[6], ks[7], expand_size)
    g2, be2, m2, v2 = bn_params(ks[8], ks[9], ks[10], ks[11], expand_size)
    g3, be3, m3, v3 = bn_params(ks[12], ks[13], ks[14], ks[15], out_size)
    gsc, besc, msc, vsc = bn_params(ks[16], ks[17], ks[18], ks[19], out_size)

    return dict(
        # channels-last weights for the Pallas kernel
        w1=jnp.transpose(w1_oihw[:, :, 0, 0], (1, 0)),               # (Cin, Cexp)
        w2=jnp.transpose(w2_oihw[:, 0, :, :], (1, 2, 0)),            # (k, k, Cexp)
        w3=jnp.transpose(w3_oihw[:, :, 0, 0], (1, 0)),               # (Cexp, Cout)
        wsc=jnp.transpose(wsc_oihw[:, :, 0, 0], (1, 0)),             # (Cin, Cout)
        # PyTorch-layout weights for the reference path
        w1_oihw=w1_oihw, w2_oihw=w2_oihw, w3_oihw=w3_oihw, wsc_oihw=wsc_oihw,
        g1=g1, be1=be1, m1=m1, v1=v1,
        g2=g2, be2=be2, m2=m2, v2=v2,
        g3=g3, be3=be3, m3=m3, v3=v3,
        gsc=gsc, besc=besc, msc=msc, vsc=vsc,
    )


if __name__ == "__main__":
    root = jax.random.PRNGKey(0)

    def run_case(key, *, kernel_size, in_size, expand_size, out_size, stride,
                 N, H, W, bf16_matmul=False, tol=1e-4):
        k_x, k_p = jax.random.split(key)
        x = jax.random.normal(k_x, (N, in_size, H, W), jnp.float32)  # NCHW
        params = make_params(k_p, kernel_size=kernel_size, in_size=in_size,
                             expand_size=expand_size, out_size=out_size)
        fwd = jax.jit(functools.partial(
            block_forward, kernel_size=kernel_size, stride=stride,
            in_size=in_size, expand_size=expand_size, out_size=out_size,
            bf16_matmul=bf16_matmul))
        out = jax.block_until_ready(fwd(x, params))
        ref = ref_forward(x, params, kernel_size=kernel_size, stride=stride,
                          in_size=in_size, expand_size=expand_size,
                          out_size=out_size)
        np.testing.assert_allclose(np.asarray(out), np.asarray(ref),
                                   rtol=tol, atol=tol)

    keys = jax.random.split(root, 4)
    # Block(3, 8, 32, 16, ReLU, None, stride=1)   -> conv+BN shortcut
    run_case(keys[0], kernel_size=3, in_size=8, expand_size=32, out_size=16,
             stride=1, N=2, H=16, W=16)
    # identity-shortcut variant (in_size == out_size)
    run_case(keys[1], kernel_size=3, in_size=16, expand_size=32, out_size=16,
             stride=1, N=2, H=16, W=16)
    # stride=2 variant (no residual per the module)
    run_case(keys[2], kernel_size=3, in_size=8, expand_size=32, out_size=16,
             stride=2, N=2, H=16, W=16)
    # bf16 MXU-operand path (v6e/v7x perf option, f32 accumulation)
    run_case(keys[3], kernel_size=3, in_size=8, expand_size=32, out_size=16,
             stride=1, N=2, H=16, W=16, bf16_matmul=True, tol=5e-2)

    print("KERNEL_OK")
</pallas_src>

<mosaic_0001>
module attributes {stable_mosaic.version = 11 : i64} {
  func.func @_block_kernel(%arg0: i32, %arg1: memref<1x256x8xf32, #tpu.memory_space<vmem>>, %arg2: memref<8x48xf32, #tpu.memory_space<vmem>>, %arg3: memref<1x48xf32, #tpu.memory_space<vmem>>, %arg4: memref<9x32xf32, #tpu.memory_space<vmem>>, %arg5: memref<1x32xf32, #tpu.memory_space<vmem>>, %arg6: memref<32x16xf32, #tpu.memory_space<vmem>>, %arg7: memref<1x16xf32, #tpu.memory_space<vmem>>, %arg8: memref<1x256x16xf32, #tpu.memory_space<vmem>>, %arg9: memref<290x32xf32, #tpu.memory_space<vmem>>) attributes {dimension_semantics = [#tpu.dimension_semantics<parallel>], iteration_bounds = array<i64: 2>, scalar_prefetch = 0 : i64, scratch_operands = 1 : i64, tpu.core_type = #tpu.core_type<tc>, window_params = [{transform_indices = @transform_0, window_bounds = array<i64: 1, 256, 8>}, {pipeline_mode = #tpu.pipeline_mode<synchronous>, transform_indices = @transform_1, window_bounds = array<i64: 8, 48>}, {pipeline_mode = #tpu.pipeline_mode<synchronous>, transform_indices = @transform_2, window_bounds = array<i64: 1, 48>}, {pipeline_mode = #tpu.pipeline_mode<synchronous>, transform_indices = @transform_3, window_bounds = array<i64: 9, 32>}, {pipeline_mode = #tpu.pipeline_mode<synchronous>, transform_indices = @transform_4, window_bounds = array<i64: 1, 32>}, {pipeline_mode = #tpu.pipeline_mode<synchronous>, transform_indices = @transform_5, window_bounds = array<i64: 32, 16>}, {pipeline_mode = #tpu.pipeline_mode<synchronous>, transform_indices = @transform_6, window_bounds = array<i64: 1, 16>}, {transform_indices = @transform_7, window_bounds = array<i64: 1, 256, 16>}]} {
    %c0 = arith.constant 0 : index
    %c0_0 = arith.constant 0 : index
    %c0_1 = arith.constant 0 : index
    %0 = vector.load %arg1[%c0, %c0_0, %c0_1] : memref<1x256x8xf32, #tpu.memory_space<vmem>>, vector<1x256x8xf32>
    %1 = vector.shape_cast %0 : vector<1x256x8xf32> to vector<256x8xf32>
    %c0_2 = arith.constant 0 : index
    %c0_3 = arith.constant 0 : index
    %2 = vector.load %arg2[%c0_2, %c0_3] : memref<8x48xf32, #tpu.memory_space<vmem>>, vector<8x48xf32>
    %cst = arith.constant dense<0.000000e+00> : vector<256x48xf32>
    %3 = tpu.matmul %1, %2, %cst {dimension_numbers = #tpu.dot_dimension_numbers<[1], [0], [0], [1], [0, 0, 1, 1], [], []>} : vector<256x8xf32>, vector<8x48xf32>, vector<256x48xf32> -> vector<256x48xf32>
    %c0_4 = arith.constant 0 : index
    %c0_5 = arith.constant 0 : index
    %4 = vector.load %arg3[%c0_4, %c0_5] : memref<1x48xf32, #tpu.memory_space<vmem>>, vector<1x48xf32>
    %5 = vector.broadcast %4 : vector<1x48xf32> to vector<256x48xf32>
    %6 = arith.addf %3, %5 : vector<256x48xf32>
    %7 = vector.extract_strided_slice %6 {offsets = [0, 0], sizes = [256, 32], strides = [1, 1]} : vector<256x48xf32> to vector<256x32xf32>
    %cst_6 = arith.constant 0.000000e+00 : f32
    %8 = vector.broadcast %cst_6 : f32 to vector<256x32xf32>
    %9 = arith.maximumf %7, %8 : vector<256x32xf32>
    %cst_7 = arith.constant 0.000000e+00 : f32
    %10 = vector.broadcast %cst_7 : f32 to vector<17x32xf32>
    %c0_8 = arith.constant 0 : index
    %c0_9 = arith.constant 0 : index
    %11 = vector.load %arg9[%c0_8, %c0_9] : memref<290x32xf32, #tpu.memory_space<vmem>>, vector<17x32xf32>
    tpu.vector_store %arg9[%c0_8, %c0_9], %10 {strides = array<i32>} : memref<290x32xf32, #tpu.memory_space<vmem>>, vector<17x32xf32>,
    %cst_10 = arith.constant 0.000000e+00 : f32
    %12 = vector.broadcast %cst_10 : f32 to vector<17x32xf32>
    %c273 = arith.constant 273 : index
    %c0_11 = arith.constant 0 : index
    %13 = vector.load %arg9[%c273, %c0_11] : memref<290x32xf32, #tpu.memory_space<vmem>>, vector<17x32xf32>
    tpu.vector_store %arg9[%c273, %c0_11], %12 {strides = array<i32>} : memref<290x32xf32, #tpu.memory_space<vmem>>, vector<17x32xf32>,
    %c17 = arith.constant 17 : index
    %c0_12 = arith.constant 0 : index
    %14 = vector.load %arg9[%c17, %c0_12] : memref<290x32xf32, #tpu.memory_space<vmem>>, vector<256x32xf32>
    tpu.vector_store %arg9[%c17, %c0_12], %9 {strides = array<i32>} : memref<290x32xf32, #tpu.memory_space<vmem>>, vector<256x32xf32>,
    %15 = tpu.iota {dimensions = array<i32: 0>} : vector<256x32xi32>
    %c16_i32 = arith.constant 16 : i32
    %c0_i32 = arith.constant 0 : i32
    %16 = arith.cmpi eq, %c16_i32, %c0_i32 : i32
    %c1_i32 = arith.constant 1 : i32
    %17 = arith.select %16, %c1_i32, %c16_i32 : i32
    %18 = vector.broadcast %17 : i32 to vector<256x32xi32>
    %19 = arith.remsi %15, %18 : vector<256x32xi32>
    %c0_i32_13 = arith.constant 0 : i32
    %20 = vector.broadcast %c0_i32_13 : i32 to vector<256x32xi32>
    %21 = arith.cmpi ne, %19, %20 : vector<256x32xi32>
    %c0_i32_14 = arith.constant 0 : i32
    %22 = vector.broadcast %c0_i32_14 : i32 to vector<256x32xi32>
    %23 = arith.cmpi slt, %19, %22 : vector<256x32xi32>
    %c0_i32_15 = arith.constant 0 : i32
    %24 = arith.cmpi slt, %17, %c0_i32_15 : i32
    %25 = vector.broadcast %24 : i1 to vector<256x32xi1>
    %26 = vector.broadcast %25 : vector<256x32xi1> to vector<256x32xi1>
    %27 = arith.xori %23, %26 : vector<256x32xi1>
    %28 = arith.andi %27, %21 : vector<256x32xi1>
    %29 = vector.broadcast %17 : i32 to vector<256x32xi32>
    %30 = arith.addi %19, %29 : vector<256x32xi32>
    %31 = arith.select %28, %30, %19 : vector<256x32xi1>, vector<256x32xi32>
    %c1_i32_16 = arith.constant 1 : i32
    %32 = vector.broadcast %c1_i32_16 : i32 to vector<256x32xi32>
    %33 = arith.cmpi sge, %31, %32 : vector<256x32xi32>
    %c15_i32 = arith.constant 15 : i32
    %34 = vector.broadcast %c15_i32 : i32 to vector<256x32xi32>
    %35 = arith.cmpi slt, %31, %34 : vector<256x32xi32>
    %cst_17 = arith.constant 0.000000e+00 : f32
    %36 = vector.broadcast %cst_17 : f32 to vector<256x32xf32>
    %c0_18 = arith.constant 0 : index
    %c0_19 = arith.constant 0 : index
    %37 = vector.load %arg9[%c0_18, %c0_19] : memref<290x32xf32, #tpu.memory_space<vmem>>, vector<256x32xf32>
    %cst_20 = arith.constant 0.000000e+00 : f32
    %38 = vector.broadcast %cst_20 : f32 to vector<256x32xf32>
    %39 = arith.select %33, %37, %38 : vector<256x32xi1>, vector<256x32xf32>
    %c0_21 = arith.constant 0 : index
    %c0_22 = arith.constant 0 : index
    %40 = vector.load %arg4[%c0_21, %c0_22] : memref<9x32xf32, #tpu.memory_space<vmem>>, vector<1x32xf32>
    %41 = vector.broadcast %40 : vector<1x32xf32> to vector<256x32xf32>
    %42 = arith.mulf %39, %41 : vector<256x32xf32>
    %43 = arith.addf %36, %42 : vector<256x32xf32>
    %c1 = arith.constant 1 : index
    %c0_23 = arith.constant 0 : index
    %44 = vector.load %arg9[%c1, %c0_23] : memref<290x32xf32, #tpu.memory_space<vmem>>, vector<256x32xf32>
    %c1_24 = arith.constant 1 : index
    %c0_25 = arith.constant 0 : index
    %45 = vector.load %arg4[%c1_24, %c0_25] : memref<9x32xf32, #tpu.memory_space<vmem>>, vector<1x32xf32>
    %46 = vector.broadcast %45 : vector<1x32xf32> to vector<256x32xf32>
    %47 = arith.mulf %44, %46 : vector<256x32xf32>
    %48 = arith.addf %43, %47 : vector<256x32xf32>
    %c2 = arith.constant 2 : index
    %c0_26 = arith.constant 0 : index
    %49 = vector.load %arg9[%c2, %c0_26] : memref<290x32xf32, #tpu.memory_space<vmem>>, vector<256x32xf32>
    %cst_27 = arith.constant 0.000000e+00 : f32
    %50 = vector.broadcast %cst_27 : f32 to vector<256x32xf32>
    %51 = arith.select %35, %49, %50 : vector<256x32xi1>, vector<256x32xf32>
    %c2_28 = arith.constant 2 : index
    %c0_29 = arith.constant 0 : index
    %52 = vector.load %arg4[%c2_28, %c0_29] : memref<9x32xf32, #tpu.memory_space<vmem>>, vector<1x32xf32>
    %53 = vector.broadcast %52 : vector<1x32xf32> to vector<256x32xf32>
    %54 = arith.mulf %51, %53 : vector<256x32xf32>
    %55 = arith.addf %48, %54 : vector<256x32xf32>
    %c16 = arith.constant 16 : index
    %c0_30 = arith.constant 0 : index
    %56 = vector.load %arg9[%c16, %c0_30] : memref<290x32xf32, #tpu.memory_space<vmem>>, vector<256x32xf32>
    %cst_31 = arith.constant 0.000000e+00 : f32
    %57 = vector.broadcast %cst_31 : f32 to vector<256x32xf32>
    %58 = arith.select %33, %56, %57 : vector<256x32xi1>, vector<256x32xf32>
    %c3 = arith.constant 3 : index
    %c0_32 = arith.constant 0 : index
    %59 = vector.load %arg4[%c3, %c0_32] : memref<9x32xf32, #tpu.memory_space<vmem>>, vector<1x32xf32>
    %60 = vector.broadcast %59 : vector<1x32xf32> to vector<256x32xf32>
    %61 = arith.mulf %58, %60 : vector<256x32xf32>
    %62 = arith.addf %55, %61 : vector<256x32xf32>
    %c17_33 = arith.constant 17 : index
    %c0_34 = arith.constant 0 : index
    %63 = vector.load %arg9[%c17_33, %c0_34] : memref<290x32xf32, #tpu.memory_space<vmem>>, vector<256x32xf32>
    %c4 = arith.constant 4 : index
    %c0_35 = arith.constant 0 : index
    %64 = vector.load %arg4[%c4, %c0_35] : memref<9x32xf32, #tpu.memory_space<vmem>>, vector<1x32xf32>
    %65 = vector.broadcast %64 : vector<1x32xf32> to vector<256x32xf32>
    %66 = arith.mulf %63, %65 : vector<256x32xf32>
    %67 = arith.addf %62, %66 : vector<256x32xf32>
    %c18 = arith.constant 18 : index
    %c0_36 = arith.constant 0 : index
    %68 = vector.load %arg9[%c18, %c0_36] : memref<290x32xf32, #tpu.memory_space<vmem>>, vector<256x32xf32>
    %cst_37 = arith.constant 0.000000e+00 : f32
    %69 = vector.broadcast %cst_37 : f32 to vector<256x32xf32>
    %70 = arith.select %35, %68, %69 : vector<256x32xi1>, vector<256x32xf32>
    %c5 = arith.constant 5 : index
    %c0_38 = arith.constant 0 : index
    %71 = vector.load %arg4[%c5, %c0_38] : memref<9x32xf32, #tpu.memory_space<vmem>>, vector<1x32xf32>
    %72 = vector.broadcast %71 : vector<1x32xf32> to vector<256x32xf32>
    %73 = arith.mulf %70, %72 : vector<256x32xf32>
    %74 = arith.addf %67, %73 : vector<256x32xf32>
    %c32 = arith.constant 32 : index
    %c0_39 = arith.constant 0 : index
    %75 = vector.load %arg9[%c32, %c0_39] : memref<290x32xf32, #tpu.memory_space<vmem>>, vector<256x32xf32>
    %cst_40 = arith.constant 0.000000e+00 : f32
    %76 = vector.broadcast %cst_40 : f32 to vector<256x32xf32>
    %77 = arith.select %33, %75, %76 : vector<256x32xi1>, vector<256x32xf32>
    %c6 = arith.constant 6 : index
    %c0_41 = arith.constant 0 : index
    %78 = vector.load %arg4[%c6, %c0_41] : memref<9x32xf32, #tpu.memory_space<vmem>>, vector<1x32xf32>
    %79 = vector.broadcast %78 : vector<1x32xf32> to vector<256x32xf32>
    %80 = arith.mulf %77, %79 : vector<256x32xf32>
    %81 = arith.addf %74, %80 : vector<256x32xf32>
    %c33 = arith.constant 33 : index
    %c0_42 = arith.constant 0 : index
    %82 = vector.load %arg9[%c33, %c0_42] : memref<290x32xf32, #tpu.memory_space<vmem>>, vector<256x32xf32>
    %c7 = arith.constant 7 : index
    %c0_43 = arith.constant 0 : index
    %83 = vector.load %arg4[%c7, %c0_43] : memref<9x32xf32, #tpu.memory_space<vmem>>, vector<1x32xf32>
    %84 = vector.broadcast %83 : vector<1x32xf32> to vector<256x32xf32>
    %85 = arith.mulf %82, %84 : vector<256x32xf32>
    %86 = arith.addf %81, %85 : vector<256x32xf32>
    %c34 = arith.constant 34 : index
    %c0_44 = arith.constant 0 : index
    %87 = vector.load %arg9[%c34, %c0_44] : memref<290x32xf32, #tpu.memory_space<vmem>>, vector<256x32xf32>
    %cst_45 = arith.constant 0.000000e+00 : f32
    %88 = vector.broadcast %cst_45 : f32 to vector<256x32xf32>
    %89 = arith.select %35, %87, %88 : vector<256x32xi1>, vector<256x32xf32>
    %c8 = arith.constant 8 : index
    %c0_46 = arith.constant 0 : index
    %90 = vector.load %arg4[%c8, %c0_46] : memref<9x32xf32, #tpu.memory_space<vmem>>, vector<1x32xf32>
    %91 = vector.broadcast %90 : vector<1x32xf32> to vector<256x32xf32>
    %92 = arith.mulf %89, %91 : vector<256x32xf32>
    %93 = arith.addf %86, %92 : vector<256x32xf32>
    %c0_47 = arith.constant 0 : index
    %c0_48 = arith.constant 0 : index
    %94 = vector.load %arg5[%c0_47, %c0_48] : memref<1x32xf32, #tpu.memory_space<vmem>>, vector<1x32xf32>
    %95 = vector.broadcast %94 : vector<1x32xf32> to vector<256x32xf32>
    %96 = arith.addf %93, %95 : vector<256x32xf32>
    %cst_49 = arith.constant 0.000000e+00 : f32
    %97 = vector.broadcast %cst_49 : f32 to vector<256x32xf32>
    %98 = arith.maximumf %96, %97 : vector<256x32xf32>
    %c0_50 = arith.constant 0 : index
    %c0_51 = arith.constant 0 : index
    %99 = vector.load %arg6[%c0_50, %c0_51] : memref<32x16xf32, #tpu.memory_space<vmem>>, vector<32x16xf32>
    %cst_52 = arith.constant dense<0.000000e+00> : vector<256x16xf32>
    %100 = tpu.matmul %98, %99, %cst_52 {dimension_numbers = #tpu.dot_dimension_numbers<[1], [0], [0], [1], [0, 0, 1, 1], [], []>} : vector<256x32xf32>, vector<32x16xf32>, vector<256x16xf32> -> vector<256x16xf32>
    %c0_53 = arith.constant 0 : index
    %c0_54 = arith.constant 0 : index
    %101 = vector.load %arg7[%c0_53, %c0_54] : memref<1x16xf32, #tpu.memory_space<vmem>>, vector<1x16xf32>
    %102 = vector.broadcast %101 : vector<1x16xf32> to vector<256x16xf32>
    %103 = arith.addf %100, %102 : vector<256x16xf32>
    %104 = vector.extract_strided_slice %6 {offsets = [0, 32], sizes = [256, 16], strides = [1, 1]} : vector<256x48xf32> to vector<256x16xf32>
    %105 = arith.addf %103, %104 : vector<256x16xf32>
    %c0_55 = arith.constant 0 : index
    %c0_56 = arith.constant 0 : index
    %c0_57 = arith.constant 0 : index
    %106 = vector.load %arg8[%c0_55, %c0_56, %c0_57] : memref<1x256x16xf32, #tpu.memory_space<vmem>>, vector<1x256x16xf32>
    %107 = vector.shape_cast %106 : vector<1x256x16xf32> to vector<256x16xf32>
    %108 = vector.shape_cast %105 : vector<256x16xf32> to vector<1x256x16xf32>
    tpu.vector_store %arg8[%c0_55, %c0_56, %c0_57], %108 {strides = array<i32>} : memref<1x256x16xf32, #tpu.memory_space<vmem>>, vector<1x256x16xf32>,
    return
  }
  func.func @transform_0(%arg0: i32) -> (i32, i32, i32) {
    %c0_i32 = arith.constant 0 : i32
    %c0_i32_0 = arith.constant 0 : i32
    %c0_i32_1 = arith.constant 0 : i32
    return %arg0, %c0_i32, %c0_i32_0 : i32, i32, i32
  }
  func.func @transform_1(%arg0: i32) -> (i32, i32) {
    %c0_i32 = arith.constant 0 : i32
    %c0_i32_0 = arith.constant 0 : i32
    %c0_i32_1 = arith.constant 0 : i32
    return %c0_i32, %c0_i32_0 : i32, i32
  }
  func.func @transform_2(%arg0: i32) -> (i32, i32) {
    %c0_i32 = arith.constant 0 : i32
    %c0_i32_0 = arith.constant 0 : i32
    %c0_i32_1 = arith.constant 0 : i32
    return %c0_i32, %c0_i32_0 : i32, i32
  }
  func.func @transform_3(%arg0: i32) -> (i32, i32) {
    %c0_i32 = arith.constant 0 : i32
    %c0_i32_0 = arith.constant 0 : i32
    %c0_i32_1 = arith.constant 0 : i32
    return %c0_i32, %c0_i32_0 : i32, i32
  }
  func.func @transform_4(%arg0: i32) -> (i32, i32) {
    %c0_i32 = arith.constant 0 : i32
    %c0_i32_0 = arith.constant 0 : i32
    %c0_i32_1 = arith.constant 0 : i32
    return %c0_i32, %c0_i32_0 : i32, i32
  }
  func.func @transform_5(%arg0: i32) -> (i32, i32) {
    %c0_i32 = arith.constant 0 : i32
    %c0_i32_0 = arith.constant 0 : i32
    %c0_i32_1 = arith.constant 0 : i32
    return %c0_i32, %c0_i32_0 : i32, i32
  }
  func.func @transform_6(%arg0: i32) -> (i32, i32) {
    %c0_i32 = arith.constant 0 : i32
    %c0_i32_0 = arith.constant 0 : i32
    %c0_i32_1 = arith.constant 0 : i32
    return %c0_i32, %c0_i32_0 : i32, i32
  }
  func.func @transform_7(%arg0: i32) -> (i32, i32, i32) {
    %c0_i32 = arith.constant 0 : i32
    %c0_i32_0 = arith.constant 0 : i32
    %c0_i32_1 = arith.constant 0 : i32
    return %arg0, %c0_i32, %c0_i32_0 : i32, i32, i32
  }
}

</mosaic_0001>

<bundles_post_ra>
// kernel: block_forward.1
= control target key start
LH: loop header
LB: loop body
LE: loop exit
PB: predicated region body
PF: predicated region fallthrough
CT: control target
= control target key end

     0   :  { %s3102_s24 = smov 0   ;;  %s4585_s0 = inlined_call_operand.vmem [shape: f32[2,256,8], index: 0, kind: input, shape index: {}]   ;;  %s4586_s1 = inlined_call_operand.vmem [shape: f32[8,48], index: 1, kind: input, shape index: {}]   ;;  %s4587_s2 = inlined_call_operand.vmem [shape: f32[1,48], index: 2, kind: input, shape index: {}]   ;;  %s4588_s3 = inlined_call_operand.vmem [shape: f32[9,32], index: 3, kind: input, shape index: {}]   ;;  %s4589_s4 = inlined_call_operand.vmem [shape: f32[1,32], index: 4, kind: input, shape index: {}]   ;;  %s4590_s5 = inlined_call_operand.vmem [shape: f32[32,16], index: 5, kind: input, shape index: {}]   ;;  %s4591_s6 = inlined_call_operand.vmem [shape: f32[1,16], index: 6, kind: input, shape index: {}]   ;;  %s4592_s7 = inlined_call_operand.vmem [shape: f32[2,256,16], index: 7, kind: output, shape index: {}]  }
   0x1 LB: > { %s2766_s25 = sadd.s32 4294967295, %s3058_s24   ;;  %p2770_p0 = scmp.ge.s32.totalorder %s3058_s24, 1  ;;  %s3058_s24 = sphi %s3102_s24, %s17_s24  }
   0x2   : > { %p237_p1 = scmp.lt.s32.totalorder %s3058_s24, 3 }
   0x4   : > { %p238_p2 = pnand %p2770_p0, %p237_p1 }
   0x6   : > { %241 = sbr.rel (%p238_p2) target bundleno = 638 (0x27e), region = 48 }
   0xb   : > { %v311_v0 = vld [vmem:[%s4586_s1] sm:$0xff]  ;;  %p269_p3 = scmp.lt.s32.totalorder %s2766_s25, 1  ;;  %vm319_vm0 = vcmask 64512   ;;  %vm673_vm1 = vcmask 261120   ;;  %v3060_v33 = vmov 0.0   ;;  %vm676_vm2 = vcmask 253952  }
   0xc   : > { %2924 = vmatprep.subr.mxu0 %v311_v0  ;;  %674 = vst.msk [vmem:[#allocation2] sm:$0xff] %vm673_vm1, %v3060_v33  ;;  %675 = vst.msk [vmem:[#allocation2 + $0x8] sm:$0xff] %vm673_vm1, %v3060_v33  ;;  %v2189_v34 = vld [vmem:[%s4590_s5 + $0x18] sm:$0xff]  ;;  %v2188_v35 = vld [vmem:[%s4590_s5 + $0x10] sm:$0xff]  ;;  %v713_v38 = vlaneseq  ;;  %s3061_s27 = smov 96  }
   0xd   : > { %2925 = vmatpush3.msra.mxu0 %v311_v0  ;;  %s4684_s25 = smov (!%p269_p3, %s2766_s25), 1  ;;  %678 = vst.msk [vmem:[#allocation2 + $0x111] sm:$0xff] %vm673_vm1, %v3060_v33  ;;  %679 = vst.msk [vmem:[#allocation2 + $0x119] sm:$0xff] %vm673_vm1, %v3060_v33  ;;  %2974 = vmatprep.subr.mxu1 %v2189_v34  ;;  %v2187_v36 = vld [vmem:[%s4590_s5 + $0x8] sm:$0xff]  ;;  %v2186_v37 = vld [vmem:[%s4590_s5] sm:$0xff] }
   0xe   : > { %s2853_s28 = sshll.u32 %s4684_s25, 8  ;;  %677 = vst.msk [vmem:[#allocation2 + $0x10] sm:$0x1] %vm676_vm2, %v3060_v33  ;;  %680 = vst.msk [vmem:[#allocation2 + $0x121] sm:$0x1] %vm676_vm2, %v3060_v33  ;;  %2975 = vmatpush3.msra.mxu1 %v2189_v34  ;;  %v3203_v39 = vshrl.u32 %v713_v38, 7 }
   0xf   : > { %s3121_s8 = scalar_lea.vmem %s4585_s0, %s2853_s28  ;;  %2976 = vmatprep.subr.mxu1 %v2188_v35  ;;  %v3215_v44 = vld [vmem:[%s4588_s3] ss:$0 sm:$0xff]  ;;  %v3220_v46 = vld [vmem:[%s4588_s3 + $0x1] ss:$0 sm:$0xff]  ;;  %v3228_v51 = vld [vmem:[%s4588_s3 + $0x2] ss:$0 sm:$0xff]  ;;  %s4485_s9 = scalar_lea.vmem %s4592_s7, %s2853_s28 }
  0x10   : > { %v279_v1 = vld [vmem:[%s3121_s8] sm:$0xff]  ;;  %v280_v2 = vld [vmem:[%s3121_s8 + $0x8] sm:$0xff]  ;;  %v281_v3 = vld [vmem:[%s3121_s8 + $0x10] sm:$0xff]  ;;  %2977 = vmatpush3.msra.mxu1 %v2188_v35  ;;  %4596 = vst [vmem:[#allocation3_spill] sm:$0xff] %v3203_v39  ;;  %v750_v40 = vand.u32 15, %v3203_v39  ;;  %v716_v47 = vadd.s32 16, %v3203_v39 }
  0x11   : > { %2926 = vmatprep.mubr.msk.f32.mxu0 %vm319_vm0, %v279_v1  ;;  %v282_v4 = vld [vmem:[%s3121_s8 + $0x18] sm:$0xff]  ;;  %v283_v5 = vld [vmem:[%s3121_s8 + $0x20] sm:$0xff]  ;;  %v284_v6 = vld [vmem:[%s3121_s8 + $0x28] sm:$0xff]  ;;  %2978 = vmatprep.subr.mxu1 %v2187_v36  ;;  %v718_v55 = vadd.s32 32, %v3203_v39  ;;  %v3238_v60 = vadd.s32 8, %v3203_v39  ;;  %v3244_v0 = vadd.s32 24, %v3203_v39 }
  0x12   : > { %2927 = vmatmul.mubr.msk.f32.vlgmr.msra.gmra.mxu0 %vm319_vm0, %v280_v2  ;;  %v285_v7 = vld [vmem:[%s3121_s8 + $0x30] sm:$0xff]  ;;  %v286_v8 = vld [vmem:[%s3121_s8 + $0x38] sm:$0xff]  ;;  %v287_v9 = vld [vmem:[%s3121_s8 + $0x40] sm:$0xff]  ;;  %2979 = vmatpush3.msra.mxu1 %v2187_v36  ;;  %vm3206_vm3 = vcmp.ge.s32.totalorder %v750_v40, 1  ;;  %v764_v57 = vand.u32 15, %v716_v47  ;;  %v3306_v33 = vadd.s32 120, %v3203_v39 }
  0x13   : > { %2929 = vmatprep.mubr.msk.f32.mxu0 %vm319_vm0, %v281_v3  ;;  %v288_v10 = vld [vmem:[%s3121_s8 + $0x48] sm:$0xff]  ;;  %v289_v11 = vld [vmem:[%s3121_s8 + $0x50] sm:$0xff]  ;;  %v290_v12 = vld [vmem:[%s3121_s8 + $0x58] sm:$0xff]  ;;  %2980 = vmatprep.subr.mxu1 %v2186_v37 }
  0x14   : > { %v291_v13 = vld [vmem:[%s3121_s8 + $0x60] sm:$0xff]  ;;  %v292_v14 = vld [vmem:[%s3121_s8 + $0x68] sm:$0xff]  ;;  %v293_v15 = vld [vmem:[%s3121_s8 + $0x70] sm:$0xff]  ;;  %2981 = vmatpush3.msra.mxu1 %v2186_v37  ;;  %vm3248_vm4 = vcmp.ge.s32.totalorder %v764_v57, 1 }
  0x15   : > { %v294_v16 = vld [vmem:[%s3121_s8 + $0x78] sm:$0xff]  ;;  %v295_v17 = vld [vmem:[%s3121_s8 + $0x80] sm:$0xff]  ;;  %v296_v18 = vld [vmem:[%s3121_s8 + $0x88] sm:$0xff] }
  0x16   : > { %2930 = vmatmul.mubr.msk.f32.gmra.mxu0 %vm319_vm0, %v282_v4  ;;  %v297_v19 = vld [vmem:[%s3121_s8 + $0x90] sm:$0xff]  ;;  %v298_v20 = vld [vmem:[%s3121_s8 + $0x98] sm:$0xff]  ;;  %v299_v21 = vld [vmem:[%s3121_s8 + $0xa0] sm:$0xff]  ;;  %v778_v4 = vand.u32 15, %v718_v55 }
  0x17   : > { %2932 = vmatprep.mubr.msk.f32.mxu0 %vm319_vm0, %v283_v5  ;;  %v300_v22 = vld [vmem:[%s3121_s8 + $0xa8] sm:$0xff]  ;;  %v301_v23 = vld [vmem:[%s3121_s8 + $0xb0] sm:$0xff]  ;;  %v302_v24 = vld [vmem:[%s3121_s8 + $0xb8] sm:$0xff] }
  0x18   : > { %v303_v25 = vld [vmem:[%s3121_s8 + $0xc0] sm:$0xff]  ;;  %v304_v26 = vld [vmem:[%s3121_s8 + $0xc8] sm:$0xff]  ;;  %v305_v27 = vld [vmem:[%s3121_s8 + $0xd0] sm:$0xff]  ;;  %vm3288_vm5 = vcmp.ge.s32.totalorder %v778_v4, 1 }
  0x19   : > { %v306_v28 = vld [vmem:[%s3121_s8 + $0xd8] sm:$0xff]  ;;  %v307_v29 = vld [vmem:[%s3121_s8 + $0xe0] sm:$0xff]  ;;  %v308_v30 = vld [vmem:[%s3121_s8 + $0xe8] sm:$0xff] }
  0x1a   : > { %2933 = vmatmul.mubr.msk.f32.gmra.mxu0 %vm319_vm0, %v284_v6  ;;  %v309_v31 = vld [vmem:[%s3121_s8 + $0xf0] sm:$0xff]  ;;  %v310_v32 = vld [vmem:[%s3121_s8 + $0xf8] sm:$0xff]  ;;  %v1194_v42 = vld [vmem:[#allocation2] sm:$0xff] }
  0x1b   : > { %2935 = vmatprep.mubr.msk.f32.mxu0 %vm319_vm0, %v285_v7  ;;  %v1226_v43 = vsel %vm3206_vm3, %v1194_v42, 0.0  ;;  %v1327_v45 = vld [vmem:[#allocation2 + $0x1] sm:$0xff]  ;;  %v3233_v52 = vld [vmem:[%s4587_s2] ss:$0 sm:$0xff]  ;;  %v1328_v54 = vld [vmem:[#allocation2 + $0x9] sm:$0xff] }
  0x1c   : > { %v1263_v48 = vmul.f32 %v3215_v44, %v1226_v43  ;;  %v1364_v49 = vmul.f32 %v3220_v46, %v1327_v45  ;;  %v1428_v50 = vld [vmem:[#allocation2 + $0x2] sm:$0xff]  ;;  %v1365_v63 = vmul.f32 %v3220_v46, %v1328_v54 }
  0x1d   : > { %v1195_v53 = vld [vmem:[#allocation2 + $0x8] sm:$0xff]  ;;  %v1497_v59 = vmul.f32 %v3228_v51, %v1428_v50  ;;  %v3320_v50 = vadd.s32 144, %v3203_v39 }
  0x1e   : > { %2936 = vmatmul.mubr.msk.f32.gmra.mxu0 %vm319_vm0, %v286_v8  ;;  %v1396_v58 = vadd.f32 %v1364_v49, %v1263_v48  ;;  %v1264_v62 = vmul.f32 %v3215_v44, %v1195_v53  ;;  %v757_v8 = vand.u32 15, %v3238_v60  ;;  %v3323_v53 = vadd.s32 136, %v3203_v39 }
  0x1f   : > { %2938 = vmatprep.mubr.msk.f32.mxu0 %vm319_vm0, %v287_v9  ;;  %v3256_v9 = vadd.s32 48, %v3203_v39 }
  0x20   : > { %v3252_v7 = vadd.f32 %v1497_v59, %v1396_v58  ;;  %vm3333_vm6 = vcmp.lt.s32.totalorder %v757_v8, 15 }
  0x22   : > { %2939 = vmatmul.mubr.msk.f32.gmra.mxu0 %vm319_vm0, %v288_v10  ;;  %v3259_v10 = vadd.s32 40, %v3203_v39 }
  0x23   : > { %2941 = vmatprep.mubr.msk.f32.mxu0 %vm319_vm0, %v289_v11 }
  0x26   : > { %2942 = vmatmul.mubr.msk.f32.gmra.mxu0 %vm319_vm0, %v290_v12 }
  0x27   : > { %2944 = vmatprep.mubr.msk.f32.mxu0 %vm319_vm0, %v291_v13  ;;  %v3263_v13 = vadd.f32 %v1365_v63, %v1264_v62  ;;  %v3340_v63 = vadd.s32 160, %v3203_v39 }
  0x2a   : > { %2945 = vmatmul.mubr.msk.f32.gmra.mxu0 %vm319_vm0, %v292_v14 }
  0x2b   : > { %2947 = vmatprep.mubr.msk.f32.mxu0 %vm319_vm0, %v293_v15 }
  0x2e   : > { %2948 = vmatmul.mubr.msk.f32.gmra.mxu0 %vm319_vm0, %v294_v16  ;;  %v3267_v16 = vadd.s32 64, %v3203_v39 }
  0x2f   : > { %2950 = vmatprep.mubr.msk.f32.mxu0 %vm319_vm0, %v295_v17  ;;  %v3270_v17 = vadd.s32 80, %v3203_v39 }
  0x32   : > { %2951 = vmatmul.mubr.msk.f32.gmra.mxu0 %vm319_vm0, %v296_v18  ;;  %v3273_v18 = vadd.s32 56, %v3203_v39 }
  0x33   : > { %2953 = vmatprep.mubr.msk.f32.mxu0 %vm319_vm0, %v297_v19  ;;  %v3276_v19 = vadd.s32 72, %v3203_v39 }
  0x36   : > { %2954 = vmatmul.mubr.msk.f32.gmra.mxu0 %vm319_vm0, %v298_v20 }
  0x37   : > { %2956 = vmatprep.mubr.msk.f32.mxu0 %vm319_vm0, %v299_v21 }
  0x3a   : > { %2957 = vmatmul.mubr.msk.f32.gmra.mxu0 %vm319_vm0, %v300_v22  ;;  %v3283_v22 = vadd.s32 96, %v3203_v39 }
  0x3b   : > { %2959 = vmatprep.mubr.msk.f32.mxu0 %vm319_vm0, %v301_v23  ;;  %v3286_v23 = vadd.s32 88, %v3203_v39 }
  0x3e   : > { %2960 = vmatmul.mubr.msk.f32.gmra.mxu0 %vm319_vm0, %v302_v24 }
  0x3f   : > { %2962 = vmatprep.mubr.msk.f32.mxu0 %vm319_vm0, %v303_v25 }
  0x42   : > { %2963 = vmatmul.mubr.msk.f32.gmra.mxu0 %vm319_vm0, %v304_v26  ;;  %v792_v26 = vand.u32 15, %v3256_v9 }
  0x43   : > { %2965 = vmatprep.mubr.msk.f32.mxu0 %vm319_vm0, %v305_v27 }
  0x44   : > { %vm3426_vm7 = vcmp.ge.s32.totalorder %v792_v26, 1 }
  0x46   : > { %2966 = vmatmul.mubr.msk.f32.gmra.mxu0 %vm319_vm0, %v306_v28  ;;  %v3295_v28 = vadd.s32 112, %v3203_v39 }
  0x47   : > { %2968 = vmatprep.mubr.msk.f32.mxu0 %vm319_vm0, %v307_v29  ;;  %v3298_v29 = vadd.s32 104, %v3203_v39 }
  0x4a   : > { %2969 = vmatmul.mubr.msk.f32.gmra.mxu0 %vm319_vm0, %v308_v30 }
  0x4b   : > { %2971 = vmatprep.mubr.msk.f32.mxu0 %vm319_vm0, %v309_v31 }
  0x4e   : > { %2972 = vmatmul.mubr.msk.f32.gmra.mxu0 %vm319_vm0, %v310_v32  ;;  %v3303_v32 = vadd.s32 128, %v3203_v39 }
  0xd2   : > { %v2928_v56 = vpop.f32.mrf.mxu0 }
  0xd3   : > { %v488_v61 = vadd.f32 %v2928_v56, %v3233_v52  ;;  %v3331_v56 = vld [vmem:[%s4588_s3 + $0x3] ss:$0 sm:$0xff] }
  0xd4   : > { %v482_v1 = vpop.f32.mrf.mxu0 }
  0xd5   : > { %v642_v2 = vmax.f32 %v488_v61, 0.0  ;;  %v483_v3 = vadd.f32 %v3233_v52, %v482_v1  ;;  %2552 = vrot.lane.b32.xlu0 %v488_v61, %s3061_s27  ;;  %v3343_v1 = vadd.s32 176, %v3203_v39 }
  0xd6   : > { %v2931_v5 = vpop.f32.mrf.mxu0 }
  0xd7   : > { %682 = vst.msk [vmem:[#allocation2 + $0x19] sm:$0xff] %vm673_vm1, %v642_v2  ;;  %v641_v11 = vmax.f32 %v483_v3, 0.0  ;;  %v498_v12 = vadd.f32 %v2931_v5, %v3233_v52  ;;  %v3346_v2 = vadd.s32 152, %v3203_v39 }
  0xd8   : > { %v492_v15 = vpop.f32.mrf.mxu0 }
  0xd9   : > { %681 = vst.msk [vmem:[#allocation2 + $0x11] sm:$0xff] %vm673_vm1, %v641_v11  ;;  %v644_v20 = vmax.f32 %v498_v12, 0.0  ;;  %v493_v21 = vadd.f32 %v3233_v52, %v492_v15  ;;  %2556 = vrot.lane.b32.xlu1 %v498_v12, %s3061_s27  ;;  %2550 = vrot.lane.b32.xlu0 %v483_v3, %s3061_s27  ;;  %v3349_v3 = vadd.s32 168, %v3203_v39 }
  0xda   : > { %v2934_v24 = vpop.f32.mrf.mxu0 }
  0xdb   : > { %684 = vst.msk [vmem:[#allocation2 + $0x29] sm:$0xff] %vm673_vm1, %v644_v20  ;;  %v643_v30 = vmax.f32 %v493_v21, 0.0  ;;  %v508_v31 = vadd.f32 %v2934_v24, %v3233_v52  ;;  %4605 = vst [vmem:[#allocation4_spill] sm:$0xff] %v3349_v3 }
  0xdc   : > { %v502_v34 = vpop.f32.mrf.mxu0 }
  0xdd   : > { %683 = vst.msk [vmem:[#allocation2 + $0x21] sm:$0xff] %vm673_vm1, %v643_v30  ;;  %v646_v40 = vmax.f32 %v508_v31, 0.0  ;;  %v503_v42 = vadd.f32 %v3233_v52, %v502_v34  ;;  %2554 = vrot.lane.b32.xlu1 %v493_v21, %s3061_s27 }
  0xde   : > { %v2937_v47 = vpop.f32.mrf.mxu0  ;;  %v1330_v59 = vld [vmem:[#allocation2 + $0x19] sm:$0xff] }
  0xdf   : > { %686 = vst.msk [vmem:[#allocation2 + $0x39] sm:$0xff] %vm673_vm1, %v646_v40  ;;  %v645_v54 = vmax.f32 %v503_v42, 0.0  ;;  %v518_v55 = vadd.f32 %v2937_v47, %v3233_v52  ;;  %2558 = vrot.lane.b32.xlu0 %v503_v42, %s3061_s27  ;;  %v3367_v42 = vadd.s32 192, %v3203_v39 }
  0xe0   : > { %v512_v60 = vpop.f32.mrf.mxu0  ;;  %v1196_v61 = vld [vmem:[#allocation2 + $0x10] sm:$0xff]  ;;  %v1197_v43 = vld [vmem:[#allocation2 + $0x18] sm:$0xff] }
  0xe1   : > { %v1329_v62 = vld [vmem:[#allocation2 + $0x11] sm:$0xff]  ;;  %685 = vst.msk [vmem:[#allocation2 + $0x31] sm:$0xff] %vm673_vm1, %v645_v54  ;;  %v648_v4 = vmax.f32 %v518_v55, 0.0  ;;  %v513_v5 = vadd.f32 %v3233_v52, %v512_v60  ;;  %2560 = vrot.lane.b32.xlu1 %v508_v31, %s3061_s27  ;;  %v1228_v8 = vsel %vm3248_vm4, %v1196_v61, 0.0  ;;  %v1563_v20 = vsel %vm3206_vm3, %v1196_v61, 0.0 }
  0xe2   : > { %v1366_v11 = vmul.f32 %v3220_v46, %v1329_v62  ;;  %v2940_v12 = vpop.f32.mrf.mxu0  ;;  %v1265_v15 = vmul.f32 %v3215_v44, %v1228_v8  ;;  %v1430_v34 = vld [vmem:[#allocation2 + $0x12] sm:$0xff]  ;;  %v1600_v40 = vmul.f32 %v3331_v56, %v1563_v20  ;;  %v3398_v8 = vld [vmem:[%s4588_s3 + $0x5] ss:$0 sm:$0xff]  ;;  %v1429_v49 = vld [vmem:[#allocation2 + $0xa] sm:$0xff] }
  0xe3   : > { %688 = vst.msk [vmem:[#allocation2 + $0x49] sm:$0xff] %vm673_vm1, %v648_v4  ;;  %v647_v30 = vmax.f32 %v513_v5, 0.0  ;;  %v528_v31 = vadd.f32 %v2940_v12, %v3233_v52  ;;  %2562 = vrot.lane.b32.xlu0 %v513_v5, %s3061_s27  ;;  %v1499_v24 = vmul.f32 %v3228_v51, %v1430_v34  ;;  %v1774_v36 = vmul.f32 %v3398_v8, %v1430_v34 }
  0xe4   : > { %v522_v47 = vpop.f32.mrf.mxu0  ;;  %v1198_v54 = vld [vmem:[#allocation2 + $0x20] sm:$0xff]  ;;  %v1398_v61 = vadd.f32 %v1366_v11, %v1265_v15  ;;  %v3467_v14 = vld [vmem:[#allocation2 + $0x28] sm:$0xff] }
  0xe5   : > { %v3369_v60 = vld [vmem:[#allocation2 + $0x21] sm:$0xff]  ;;  %687 = vst.msk [vmem:[#allocation2 + $0x41] sm:$0xff] %vm673_vm1, %v647_v30  ;;  %v650_v5 = vmax.f32 %v528_v31, 0.0  ;;  %v523_v12 = vadd.f32 %v3233_v52, %v522_v47  ;;  %2564 = vrot.lane.b32.xlu1 %v518_v55, %s3061_s27  ;;  %v1230_v20 = vsel %vm3288_vm5, %v1198_v54, 0.0  ;;  %v1565_v30 = vsel %vm3248_vm4, %v1198_v54, 0.0 }
  0xe6   : > { %v2943_v11 = vpop.f32.mrf.mxu0  ;;  %v1267_v15 = vmul.f32 %v3215_v44, %v1230_v20  ;;  %v1368_v4 = vmul.f32 %v3220_v46, %v3369_v60  ;;  %v3389_v55 = vld [vmem:[%s4588_s3 + $0x4] ss:$0 sm:$0xff]  ;;  %v1632_v20 = vadd.f32 %v1600_v40, %v3252_v7  ;;  %v1531_v38 = vadd.f32 %v1499_v24, %v1398_v61  ;;  %v3416_v24 = vld [vmem:[%s4588_s3 + $0x6] ss:$0 sm:$0xff] }
  0xe7   : > { %690 = vst.msk [vmem:[#allocation2 + $0x59] sm:$0xff] %vm673_vm1, %v650_v5  ;;  %v649_v47 = vmax.f32 %v523_v12, 0.0  ;;  %v538_v21 = vadd.f32 %v2943_v11, %v3233_v52  ;;  %2566 = vrot.lane.b32.xlu0 %v523_v12, %s3061_s27  ;;  %v1602_v5 = vmul.f32 %v3331_v56, %v1565_v30  ;;  %v1671_v11 = vmul.f32 %v3389_v55, %v1329_v62  ;;  %v1432_v58 = vld [vmem:[#allocation2 + $0x22] sm:$0xff] }
  0xe8   : > { %v532_v45 = vpop.f32.mrf.mxu0  ;;  %v3401_v48 = vld [vmem:[#allocation2 + $0x30] sm:$0xff]  ;;  %v3406_v12 = vmul.f32 %v3220_v46, %v1330_v59  ;;  %v1840_v37 = vsel %vm3206_vm3, %v1198_v54, 0.0  ;;  %v3419_v62 = vmul.f32 %v3389_v55, %v1330_v59  ;;  %v1400_v30 = vadd.f32 %v1368_v4, %v1267_v15 }
  0xe9   : > { %689 = vst.msk [vmem:[#allocation2 + $0x51] sm:$0xff] %vm673_vm1, %v649_v47  ;;  %v652_v7 = vmax.f32 %v538_v21, 0.0  ;;  %v533_v40 = vadd.f32 %v3233_v52, %v532_v45  ;;  %2568 = vrot.lane.b32.xlu1 %v528_v31, %s3061_s27  ;;  %v1703_v47 = vadd.f32 %v1671_v11, %v1632_v20  ;;  %v1461_v45 = vsel %vm3333_vm6, %v1429_v49, 0.0  ;;  %v1333_v57 = vld [vmem:[#allocation2 + $0x31] sm:$0xff] }
  0xea   : > { %v2946_v61 = vpop.f32.mrf.mxu0  ;;  %v1567_v34 = vsel %vm3288_vm5, %v3401_v48, 0.0  ;;  %v3437_v54 = vmul.f32 %v3215_v44, %v1197_v43  ;;  %v1501_v9 = vmul.f32 %v3228_v51, %v1432_v58  ;;  %v1634_v26 = vadd.f32 %v1602_v5, %v1531_v38 }
  0xeb   : > { %692 = vst.msk [vmem:[#allocation2 + $0x69] sm:$0xff] %vm673_vm1, %v652_v7  ;;  %v651_v31 = vmax.f32 %v533_v40, 0.0  ;;  %v548_v59 = vadd.f32 %v2946_v61, %v3233_v52  ;;  %2570 = vrot.lane.b32.xlu0 %v533_v40, %s3061_s27  ;;  %v1806_v4 = vadd.f32 %v1774_v36, %v1703_v47  ;;  %v1877_v15 = vmul.f32 %v3416_v24, %v1840_v37  ;;  %v3449_v40 = vld [vmem:[%s4588_s3 + $0x7] ss:$0 sm:$0xff]  ;;  %v3454_v36 = vld [vmem:[%s4588_s3 + $0x8] ss:$0 sm:$0xff] }
  0xec   : > { %v542_v49 = vpop.f32.mrf.mxu0  ;;  %v1673_v7 = vmul.f32 %v3389_v55, %v3369_v60  ;;  %v3456_v37 = vld [vmem:[#allocation2 + $0x1a] sm:$0xff]  ;;  %v1498_v38 = vmul.f32 %v3228_v51, %v1461_v45  ;;  %v1533_v61 = vadd.f32 %v1501_v9, %v1400_v30  ;;  %v1601_v30 = vmul.f32 %v3331_v56, %v1197_v43 }
  0xed   : > { %691 = vst.msk [vmem:[#allocation2 + $0x61] sm:$0xff] %vm673_vm1, %v651_v31  ;;  %v654_v20 = vmax.f32 %v548_v59, 0.0  ;;  %v543_v11 = vadd.f32 %v3233_v52, %v542_v49  ;;  %2572 = vrot.lane.b32.xlu1 %v538_v21, %s3061_s27  ;;  %v1604_v21 = vmul.f32 %v3331_v56, %v1567_v34  ;;  %v1909_v47 = vadd.f32 %v1877_v15, %v1806_v4  ;;  %v3462_v49 = vld [vmem:[#allocation2 + $0x29] sm:$0xff]  ;;  %v3561_v3 = vld [vmem:[#allocation2 + $0x40] sm:$0xff] }
  0xee   : > { %v2949_v5 = vpop.f32.mrf.mxu0  ;;  %v1948_v31 = vmul.f32 %v3449_v40, %v3369_v60  ;;  %v1530_v45 = vadd.f32 %v1498_v38, %v3263_v13  ;;  %v4608_v34 = vand.u32 15, %v3244_v0  ;;  %v1705_v4 = vadd.f32 %v1673_v7, %v1634_v26  ;;  %v3487_v0 = vld [vmem:[%s4589_s4] ss:$0 sm:$0xff]  ;;  %v3491_v7 = vld [vmem:[#allocation2 + $0x2a] sm:$0xff] }
  0xef   : > { %694 = vst.msk [vmem:[#allocation2 + $0x79] sm:$0xff] %vm673_vm1, %v654_v20  ;;  %v653_v27 = vmax.f32 %v543_v11, 0.0  ;;  %v558_v35 = vadd.f32 %v2949_v5, %v3233_v52  ;;  %2574 = vrot.lane.b32.xlu0 %v543_v11, %s3061_s27  ;;  %v2051_v20 = vmul.f32 %v3454_v36, %v1432_v58  ;;  %v1738_v11 = vsel %vm3333_vm6, %v3456_v37, 0.0 }
  0xf0   : > { %vm3473_vm8 = vcmp.lt.s32.totalorder %v4608_v34, 15  ;;  %v552_v60 = vpop.f32.mrf.mxu0  ;;  %v1980_v15 = vadd.f32 %v1948_v31, %v1909_v47  ;;  %v1369_v26 = vmul.f32 %v3220_v46, %v3462_v49  ;;  %v1633_v38 = vadd.f32 %v1601_v30, %v1530_v45 }
  0xf1   : > { %693 = vst.msk [vmem:[#allocation2 + $0x71] sm:$0xff] %vm673_vm1, %v653_v27  ;;  %v656_v13 = vmax.f32 %v558_v35, 0.0  ;;  %v553_v43 = vadd.f32 %v3233_v52, %v552_v60  ;;  %2576 = vrot.lane.b32.xlu1 %v548_v59, %s3061_s27  ;;  %v3493_v47 = vadd.f32 %v1604_v21, %v1533_v61  ;;  %v1776_v27 = vmul.f32 %v3398_v8, %v1432_v58 }
  0xf2   : > { %v2952_v5 = vpop.f32.mrf.mxu0  ;;  %v2083_v31 = vadd.f32 %v2051_v20, %v1980_v15  ;;  %v1268_v59 = vmul.f32 %v3215_v44, %v3467_v14  ;;  %v1704_v39 = vadd.f32 %v3419_v62, %v1633_v38  ;;  %v1775_v45 = vmul.f32 %v3398_v8, %v1738_v11 }
  0xf3   : > { %696 = vst.msk [vmem:[#allocation2 + $0x89] sm:$0xff] %vm673_vm1, %v656_v13  ;;  %v655_v34 = vmax.f32 %v553_v43, 0.0  ;;  %v568_v60 = vadd.f32 %v2952_v5, %v3233_v52  ;;  %2578 = vrot.lane.b32.xlu0 %v553_v43, %s3061_s27  ;;  %v1808_v61 = vadd.f32 %v1776_v27, %v1705_v4  ;;  %v1878_v58 = vmul.f32 %v3416_v24, %v3467_v14 }
  0xf4   : > { %v562_v30 = vpop.f32.mrf.mxu0  ;;  %v2122_v21 = vadd.f32 %v3487_v0, %v2083_v31  ;;  %v2015_v15 = vsel %vm3333_vm6, %v3491_v7, 0.0  ;;  %v4611_v20 = vand.u32 15, %v3267_v16  ;;  %v1807_v11 = vadd.f32 %v1775_v45, %v1704_v39  ;;  %v1434_v45 = vld [vmem:[#allocation2 + $0x32] sm:$0xff] }
  0xf5   : > { %695 = vst.msk [vmem:[#allocation2 + $0x81] sm:$0xff] %vm673_vm1, %v655_v34  ;;  %v658_v62 = vmax.f32 %v568_v60, 0.0  ;;  %v563_v4 = vadd.f32 %v3233_v52, %v562_v30  ;;  %2580 = vrot.lane.b32.xlu1 %v558_v35, %s3061_s27  ;;  %v1232_v43 = vsel %vm3426_vm7, %v3401_v48, 0.0  ;;  %v3521_v16 = vadd.f32 %v1369_v26, %v1268_v59 }
  0xf6   : > { %vm3511_vm9 = vcmp.ge.s32.totalorder %v4611_v20, 1  ;;  %v2154_v38 = vmax.f32 %v2122_v21, 0.0  ;;  %v2955_v5 = vpop.f32.mrf.mxu0  ;;  %v1949_v27 = vmul.f32 %v3449_v40, %v3462_v49  ;;  %v1842_v31 = vsel %vm3248_vm4, %v3401_v48, 0.0 }
  0xf7   : > { %698 = vst.msk [vmem:[#allocation2 + $0x99] sm:$0xff] %vm673_vm1, %v658_v62  ;;  %v657_v35 = vmax.f32 %v563_v4, 0.0  ;;  %v578_v39 = vadd.f32 %v2955_v5, %v3233_v52  ;;  %v1910_v34 = vadd.f32 %v1878_v58, %v1807_v11  ;;  %2582 = vrot.lane.b32.xlu0 %v563_v4, %s3061_s27  ;;  %v1879_v30 = vmul.f32 %v3416_v24, %v1842_v31  ;;  %v1201_v5 = vld [vmem:[#allocation2 + $0x38] sm:$0xff] }
  0xf8   : > { %2982 = vmatprep.mubr.msk.f32.mxu1 %vm673_vm1, %v2154_v38  ;;  %v2052_v26 = vmul.f32 %v3454_v36, %v2015_v15  ;;  %v572_v59 = vpop.f32.mrf.mxu0  ;;  %v1269_v21 = vmul.f32 %v3215_v44, %v1232_v43  ;;  %v1370_v6 = vmul.f32 %v3220_v46, %v1333_v57  ;;  %v1950_v48 = vmul.f32 %v3449_v40, %v1333_v57 }
  0xf9   : > { %697 = vst.msk [vmem:[#allocation2 + $0x91] sm:$0xff] %vm673_vm1, %v657_v35  ;;  %v660_v20 = vmax.f32 %v578_v39, 0.0  ;;  %v1981_v58 = vadd.f32 %v1949_v27, %v1910_v34  ;;  %v573_v62 = vadd.f32 %v3233_v52, %v572_v59  ;;  %v1911_v4 = vadd.f32 %v1879_v30, %v1808_v61  ;;  %2584 = vrot.lane.b32.xlu1 %v568_v60, %s3061_s27  ;;  %v1334_v34 = vld [vmem:[#allocation2 + $0x39] sm:$0xff] }
  0xfa   : > { %v1603_v11 = vmul.f32 %v3331_v56, %v3467_v14  ;;  %v1674_v15 = vmul.f32 %v3389_v55, %v3462_v49  ;;  %v2053_v43 = vmul.f32 %v3454_v36, %v1434_v45  ;;  %v2958_v38 = vpop.f32.mrf.mxu0  ;;  %v1463_v31 = vsel %vm3473_vm8, %v3456_v37, 0.0 }
  0xfb   : > { %v4614_v27 = vand.u32 15, %v3259_v10  ;;  %700 = vst.msk [vmem:[#allocation2 + $0xa9] sm:$0xff] %vm673_vm1, %v660_v20  ;;  %v2084_v14 = vadd.f32 %v2052_v26, %v1981_v58  ;;  %v659_v60 = vmax.f32 %v573_v62, 0.0  ;;  %v1982_v35 = vadd.f32 %v1950_v48, %v1911_v4  ;;  %2586 = vrot.lane.b32.xlu0 %v573_v62, %s3061_s27  ;;  %v1335_v62 = vld [vmem:[#allocation2 + $0x41] sm:$0xff] }
  0xfc   : > { %v588_v49 = vadd.f32 %v2958_v38, %v3233_v52  ;;  %v1402_v30 = vadd.f32 %v1370_v6, %v1269_v21  ;;  %v1503_v59 = vmul.f32 %v3228_v51, %v1434_v45  ;;  %v1399_v10 = vadd.f32 %v3406_v12, %v3437_v54  ;;  %v1209_v38 = vld [vmem:[#allocation2 + $0x78] sm:$0xff] }
  0xfd   : > { %vm3550_vm10 = vcmp.lt.s32.totalorder %v4614_v27, 15  ;;  %v1500_v37 = vmul.f32 %v3228_v51, %v1463_v31  ;;  %v582_v27 = vpop.f32.mrf.mxu0  ;;  %v2123_v26 = vadd.f32 %v3487_v0, %v2084_v14  ;;  %699 = vst.msk [vmem:[#allocation2 + $0xa1] sm:$0xff] %vm673_vm1, %v659_v60  ;;  %v2085_v48 = vadd.f32 %v2053_v43, %v1982_v35  ;;  %2588 = vrot.lane.b32.xlu1 %v578_v39, %s3061_s27 }
  0xfe   : > { %v662_v20 = vmax.f32 %v588_v49, 0.0  ;;  %v1270_v58 = vmul.f32 %v3215_v44, %v1201_v5  ;;  %v1675_v21 = vmul.f32 %v3389_v55, %v1333_v57  ;;  %v1371_v6 = vmul.f32 %v3220_v46, %v1334_v34 }
  0xff   : > { %v1532_v12 = vadd.f32 %v1500_v37, %v1399_v10  ;;  %v583_v54 = vadd.f32 %v3233_v52, %v582_v27  ;;  %v4617_v4 = vand.u32 15, %v3270_v17  ;;  %v2155_v43 = vmax.f32 %v2123_v26, 0.0  ;;  %v2961_v10 = vpop.f32.mrf.mxu0  ;;  %v3591_v26 = vld [vmem:[#allocation2 + $0x3a] sm:$0xff] }
 0x100   : > { %v2124_v31 = vadd.f32 %v3487_v0, %v2085_v48  ;;  %702 = vst.msk [vmem:[#allocation2 + $0xb9] sm:$0xff] %vm673_vm1, %v662_v20  ;;  %v1740_v57 = vsel %vm3473_vm8, %v3491_v7, 0.0  ;;  %v1234_v39 = vsel %vm3511_vm9, %v3561_v3, 0.0  ;;  %v3584_v14 = vadd.f32 %v1503_v59, %v1402_v30 }
 0x101   : > { %vm3572_vm11 = vcmp.ge.s32.totalorder %v4617_v4, 1  ;;  %v1778_v17 = vmul.f32 %v3398_v8, %v1434_v45  ;;  %v1635_v60 = vadd.f32 %v1603_v11, %v1532_v12  ;;  %v661_v35 = vmax.f32 %v583_v54, 0.0  ;;  %2590 = vrot.lane.b32.xlu0 %v583_v54, %s3061_s27  ;;  %2983 = vmatmul.mubr.msk.f32.vlgmr.msra.gmra.mxu1 %vm673_vm1, %v2155_v43  ;;  %v1436_v4 = vld [vmem:[#allocation2 + $0x42] sm:$0xff] }
 0x102   : > { %v2156_v37 = vmax.f32 %v2124_v31, 0.0  ;;  %v3589_v27 = vadd.f32 %v1371_v6, %v1270_v58  ;;  %v1271_v48 = vmul.f32 %v3215_v44, %v1234_v39  ;;  %v1372_v20 = vmul.f32 %v3220_v46, %v1335_v62  ;;  %2592 = vrot.lane.b32.xlu1 %v588_v49, %s3061_s27 }
 0x103   : > { %v1605_v45 = vmul.f32 %v3331_v56, %v1201_v5  ;;  %v1706_v11 = vadd.f32 %v1674_v15, %v1635_v60  ;;  %v1777_v30 = vmul.f32 %v3398_v8, %v1740_v57  ;;  %701 = vst.msk [vmem:[#allocation2 + $0xb1] sm:$0xff] %vm673_vm1, %v661_v35  ;;  %v1707_v59 = vadd.f32 %v1675_v21, %v3493_v47  ;;  %v592_v35 = vpop.f32.mrf.mxu0 }
 0x104   : > { %2985 = vmatprep.mubr.msk.f32.mxu1 %vm673_vm1, %v2156_v37  ;;  %v1676_v58 = vmul.f32 %v3389_v55, %v1334_v34  ;;  %v1880_v6 = vmul.f32 %v3416_v24, %v1201_v5  ;;  %v1844_v12 = vsel %vm3288_vm5, %v3561_v3, 0.0  ;;  %v598_v49 = vadd.f32 %v2961_v10, %v3233_v52 }
 0x105   : > { %v1809_v54 = vadd.f32 %v1777_v30, %v1706_v11  ;;  %v2017_v15 = vsel %vm3473_vm8, %v3591_v26, 0.0  ;;  %v1810_v43 = vadd.f32 %v1778_v17, %v1707_v59  ;;  %v1881_v47 = vmul.f32 %v3416_v24, %v1844_v12  ;;  %v3618_v17 = vld [vmem:[#allocation2 + $0x50] sm:$0xff]  ;;  %v1203_v59 = vld [vmem:[#allocation2 + $0x48] sm:$0xff] }
 0x106   : > { %v1951_v21 = vmul.f32 %v3449_v40, %v1334_v34  ;;  %v1404_v31 = vadd.f32 %v1372_v20, %v1271_v48  ;;  %v664_v57 = vmax.f32 %v598_v49, 0.0  ;;  %v1465_v25 = vsel %vm3550_vm10, %v3491_v7, 0.0  ;;  %2596 = vrot.lane.b32.xlu1 %v598_v49, %s3061_s27 }
 0x107   : > { %v1912_v5 = vadd.f32 %v1880_v6, %v1809_v54  ;;  %v1913_v39 = vadd.f32 %v1881_v47, %v1810_v43  ;;  %v1952_v60 = vmul.f32 %v3449_v40, %v1335_v62  ;;  %v1502_v9 = vmul.f32 %v3228_v51, %v1465_v25 }
 0x108   : > { %v4620_v10 = vand.u32 15, %v3273_v18  ;;  %v2054_v37 = vmul.f32 %v3454_v36, %v2017_v15  ;;  %v1505_v7 = vmul.f32 %v3228_v51, %v1436_v4  ;;  %v1569_v48 = vsel %vm3426_vm7, %v3561_v3, 0.0  ;;  %704 = vst.msk [vmem:[#allocation2 + $0xc9] sm:$0xff] %vm673_vm1, %v664_v57  ;;  %v1337_v15 = vld [vmem:[#allocation2 + $0x51] sm:$0xff] }
 0x109   : > { %v2055_v20 = vmul.f32 %v3454_v36, %v1436_v4  ;;  %v1983_v11 = vadd.f32 %v1951_v21, %v1912_v5  ;;  %v1984_v30 = vadd.f32 %v1952_v60, %v1913_v39  ;;  %v1534_v18 = vadd.f32 %v1502_v9, %v3521_v16  ;;  %v1336_v16 = vld [vmem:[#allocation2 + $0x49] sm:$0xff] }
 0x10a   : > { %vm3622_vm12 = vcmp.lt.s32.totalorder %v4620_v10, 15  ;;  %v1742_v6 = vsel %vm3550_vm10, %v3591_v26, 0.0  ;;  %v1677_v12 = vmul.f32 %v3389_v55, %v1335_v62  ;;  %v1780_v49 = vmul.f32 %v3398_v8, %v1436_v4  ;;  %v3646_v5 = vld [vmem:[#allocation2 + $0x4a] sm:$0xff] }
 0x10b   : > { %v593_v54 = vadd.f32 %v3233_v52, %v592_v35  ;;  %v1236_v3 = vsel %vm3572_vm11, %v3618_v17, 0.0  ;;  %v2086_v43 = vadd.f32 %v2054_v37, %v1983_v11  ;;  %v3643_v47 = vadd.f32 %v1505_v7, %v1404_v31 }
 0x10c   : > { %v2087_v21 = vadd.f32 %v2055_v20, %v1984_v30  ;;  %v1637_v57 = vadd.f32 %v1605_v45, %v1534_v18  ;;  %v1272_v25 = vmul.f32 %v3215_v44, %v1203_v59  ;;  %v1779_v62 = vmul.f32 %v3398_v8, %v1742_v6  ;;  %v2964_v20 = vpop.f32.mrf.mxu0 }
 0x10d   : > { %v663_v4 = vmax.f32 %v593_v54, 0.0  ;;  %v1273_v39 = vmul.f32 %v3215_v44, %v1236_v3  ;;  %2594 = vrot.lane.b32.xlu0 %v593_v54, %s3061_s27  ;;  %v2125_v60 = vadd.f32 %v3487_v0, %v2086_v43  ;;  %v1374_v35 = vmul.f32 %v3220_v46, %v1337_v15  ;;  %v1438_v3 = vld [vmem:[#allocation2 + $0x52] sm:$0xff] }
 0x10e   : > { %v2126_v9 = vadd.f32 %v3487_v0, %v2087_v21  ;;  %v1708_v31 = vadd.f32 %v1676_v58, %v1637_v57  ;;  %v1373_v45 = vmul.f32 %v3220_v46, %v1336_v16  ;;  %v1607_v10 = vmul.f32 %v3331_v56, %v1203_v59 }
 0x10f   : > { %v1882_v37 = vmul.f32 %v3416_v24, %v1203_v59  ;;  %703 = vst.msk [vmem:[#allocation2 + $0xc1] sm:$0xff] %vm673_vm1, %v663_v4  ;;  %v1606_v7 = vmul.f32 %v3331_v56, %v1569_v48  ;;  %v4623_v11 = vand.u32 15, %v3283_v22  ;;  %v2157_v58 = vmax.f32 %v2125_v60, 0.0 }
 0x110   : > { %v2158_v18 = vmax.f32 %v2126_v9, 0.0  ;;  %v1811_v6 = vadd.f32 %v1779_v62, %v1708_v31  ;;  %v2019_v54 = vsel %vm3550_vm10, %v3646_v5, 0.0  ;;  %v3668_v59 = vadd.f32 %v1373_v45, %v1272_v25  ;;  %v1205_v9 = vld [vmem:[#allocation2 + $0x58] sm:$0xff] }
 0x111   : > { %vm3661_vm13 = vcmp.ge.s32.totalorder %v4623_v11, 1  ;;  %v1678_v43 = vmul.f32 %v3389_v55, %v1336_v16  ;;  %v1953_v48 = vmul.f32 %v3449_v40, %v1336_v16  ;;  %v1638_v22 = vadd.f32 %v1606_v7, %v3584_v14  ;;  %2986 = vmatmul.mubr.msk.f32.gmra.mxu1 %vm673_vm1, %v2157_v58 }
 0x112   : > { %v1914_v21 = vadd.f32 %v1882_v37, %v1811_v6  ;;  %v1406_v57 = vadd.f32 %v1374_v35, %v1273_v39  ;;  %v1846_v62 = vsel %vm3426_vm7, %v3618_v17, 0.0  ;;  %v608_v61 = vadd.f32 %v2964_v20, %v3233_v52  ;;  %2988 = vmatprep.mubr.msk.f32.mxu1 %vm673_vm1, %v2158_v18  ;;  %v602_v35 = vpop.f32.mrf.mxu0  ;;  %v1338_v20 = vld [vmem:[#allocation2 + $0x59] sm:$0xff] }
 0x113   : > { %v2056_v25 = vmul.f32 %v3454_v36, %v2019_v54  ;;  %v1507_v4 = vmul.f32 %v3228_v51, %v1438_v3  ;;  %v1709_v60 = vadd.f32 %v1677_v12, %v1638_v22  ;;  %v1467_v14 = vsel %vm3622_vm12, %v3591_v26, 0.0  ;;  %v3708_v22 = vld [vmem:[#allocation2 + $0x60] sm:$0xff] }
 0x114   : > { %v1985_v16 = vadd.f32 %v1953_v48, %v1914_v21  ;;  %v1571_v39 = vsel %vm3511_vm9, %v3618_v17, 0.0  ;;  %v666_v41 = vmax.f32 %v608_v61, 0.0  ;;  %v1504_v31 = vmul.f32 %v3228_v51, %v1467_v14  ;;  %2600 = vrot.lane.b32.xlu1 %v608_v61, %s3061_s27 }
 0x115   : > { %v4626_v45 = vand.u32 15, %v3276_v19  ;;  %v1679_v26 = vmul.f32 %v3389_v55, %v1337_v15  ;;  %v1782_v12 = vmul.f32 %v3398_v8, %v1438_v3  ;;  %v1812_v7 = vadd.f32 %v1780_v49, %v1709_v60 }
 0x116   : > { %v1883_v17 = vmul.f32 %v3416_v24, %v1846_v62  ;;  %v2088_v11 = vadd.f32 %v2056_v25, %v1985_v16  ;;  %v3698_v58 = vadd.f32 %v1507_v4, %v1406_v57  ;;  %706 = vst.msk [vmem:[#allocation2 + $0xd9] sm:$0xff] %vm673_vm1, %v666_v41  ;;  %v1536_v19 = vadd.f32 %v1504_v31, %v3589_v27  ;;  %v3713_v27 = vld [vmem:[#allocation2 + $0x5a] sm:$0xff]  ;;  %v3999_v16 = vld [vmem:[%s4588_s3 + $0x4] ss:$0 sm:$0xff] }
 0x117   : > { %vm3690_vm14 = vcmp.lt.s32.totalorder %v4626_v45, 15  ;;  %v1744_v18 = vsel %vm3622_vm12, %v3646_v5, 0.0  ;;  %v1954_v54 = vmul.f32 %v3449_v40, %v1337_v15  ;;  %v1274_v48 = vmul.f32 %v3215_v44, %v1205_v9  ;;  %v1339_v31 = vld [vmem:[#allocation2 + $0x61] sm:$0xff] }
 0x118   : > { %v1915_v6 = vadd.f32 %v1883_v17, %v1812_v7  ;;  %v603_v49 = vadd.f32 %v3233_v52, %v602_v35  ;;  %v2127_v21 = vadd.f32 %v3487_v0, %v2088_v11  ;;  %v2057_v57 = vmul.f32 %v3454_v36, %v1438_v3  ;;  %v2967_v11 = vpop.f32.mrf.mxu0 }
 0x119   : > { %v1375_v62 = vmul.f32 %v3220_v46, %v1338_v20  ;;  %v1639_v61 = vadd.f32 %v1607_v10, %v1536_v19  ;;  %v1609_v4 = vmul.f32 %v3331_v56, %v1205_v9  ;;  %v1781_v15 = vmul.f32 %v3398_v8, %v1744_v18  ;;  %v1440_v18 = vld [vmem:[#allocation2 + $0x62] sm:$0xff] }
 0x11a   : > { %v1986_v25 = vadd.f32 %v1954_v54, %v1915_v6  ;;  %v665_v60 = vmax.f32 %v603_v49, 0.0  ;;  %2598 = vrot.lane.b32.xlu0 %v603_v49, %s3061_s27  ;;  %v4629_v14 = vand.u32 15, %v3295_v28  ;;  %v2159_v3 = vmax.f32 %v2127_v21, 0.0 }
 0x11b   : > { %v1710_v41 = vadd.f32 %v1678_v43, %v1639_v61  ;;  %v1238_v10 = vsel %vm3661_vm13, %v3708_v22, 0.0  ;;  %v1608_v35 = vmul.f32 %v3331_v56, %v1571_v39  ;;  %v3728_v7 = vadd.f32 %v1375_v62, %v1274_v48 }
 0x11c   : > { %vm3720_vm15 = vcmp.ge.s32.totalorder %v4629_v14, 1  ;;  %v2089_v45 = vadd.f32 %v2057_v57, %v1986_v25  ;;  %v1680_v17 = vmul.f32 %v3389_v55, %v1338_v20  ;;  %v2021_v28 = vsel %vm3622_vm12, %v3713_v27, 0.0  ;;  %705 = vst.msk [vmem:[#allocation2 + $0xd1] sm:$0xff] %vm673_vm1, %v665_v60  ;;  %2989 = vmatmul.mubr.msk.f32.gmra.mxu1 %vm673_vm1, %v2159_v3  ;;  %v1207_v14 = vld [vmem:[#allocation2 + $0x68] sm:$0xff] }
 0x11d   : > { %v1813_v43 = vadd.f32 %v1781_v15, %v1710_v41  ;;  %v1884_v19 = vmul.f32 %v3416_v24, %v1205_v9  ;;  %v1640_v39 = vadd.f32 %v1608_v35, %v3643_v47  ;;  %v1848_v6 = vsel %vm3511_vm9, %v3708_v22, 0.0  ;;  %v612_v41 = vpop.f32.mrf.mxu0 }
 0x11e   : > { %v2128_v54 = vadd.f32 %v3487_v0, %v2089_v45  ;;  %v1955_v34 = vmul.f32 %v3449_v40, %v1338_v20  ;;  %v1275_v48 = vmul.f32 %v3215_v44, %v1238_v10  ;;  %v1376_v49 = vmul.f32 %v3220_v46, %v1339_v31 }
 0x11f   : > { %v1916_v21 = vadd.f32 %v1884_v19, %v1813_v43  ;;  %v2058_v57 = vmul.f32 %v3454_v36, %v2021_v28  ;;  %v1711_v62 = vadd.f32 %v1679_v26, %v1640_v39  ;;  %v618_v9 = vadd.f32 %v2967_v11, %v3233_v52  ;;  %v3766_v28 = vld [vmem:[#allocation2 + $0x70] sm:$0xff] }
 0x120   : > { %v2160_v61 = vmax.f32 %v2128_v54, 0.0  ;;  %v1509_v47 = vmul.f32 %v3228_v51, %v1440_v18  ;;  %v1885_v13 = vmul.f32 %v3416_v24, %v1848_v6  ;;  %v1469_v25 = vsel %vm3690_vm14, %v3646_v5, 0.0  ;;  %v1340_v43 = vld [vmem:[#allocation2 + $0x69] sm:$0xff] }
 0x121   : > { %v1987_v20 = vadd.f32 %v1955_v34, %v1916_v21  ;;  %v1814_v15 = vadd.f32 %v1782_v12, %v1711_v62  ;;  %v668_v60 = vmax.f32 %v618_v9, 0.0  ;;  %v1506_v3 = vmul.f32 %v3228_v51, %v1469_v25  ;;  %2604 = vrot.lane.b32.xlu1 %v618_v9, %s3061_s27 }
 0x122   : > { %v4632_v26 = vand.u32 15, %v3286_v23  ;;  %2991 = vmatprep.mubr.msk.f32.mxu1 %vm673_vm1, %v2160_v61  ;;  %v1408_v35 = vadd.f32 %v1376_v49, %v1275_v48  ;;  %v1573_v5 = vsel %vm3572_vm11, %v3708_v22, 0.0  ;;  %v1681_v12 = vmul.f32 %v3389_v55, %v1339_v31 }
 0x123   : > { %v1956_v45 = vmul.f32 %v3449_v40, %v1339_v31  ;;  %v2090_v23 = vadd.f32 %v2058_v57, %v1987_v20  ;;  %v1917_v11 = vadd.f32 %v1885_v13, %v1814_v15  ;;  %708 = vst.msk [vmem:[#allocation2 + $0xe9] sm:$0xff] %vm673_vm1, %v668_v60  ;;  %v1538_v19 = vadd.f32 %v1506_v3, %v3668_v59  ;;  %v3776_v31 = vld [vmem:[#allocation2 + $0x6a] sm:$0xff] }
 0x124   : > { %vm3755_vm0 = vcmp.lt.s32.totalorder %v4632_v26, 15  ;;  %v1746_v39 = vsel %vm3690_vm14, %v3713_v27, 0.0  ;;  %v1784_v6 = vmul.f32 %v3398_v8, %v1440_v18  ;;  %v2059_v22 = vmul.f32 %v3454_v36, %v1440_v18  ;;  %v1341_v57 = vld [vmem:[#allocation2 + $0x71] sm:$0xff] }
 0x125   : > { %v1276_v54 = vmul.f32 %v3215_v44, %v1207_v14  ;;  %v613_v34 = vadd.f32 %v3233_v52, %v612_v41  ;;  %v2129_v48 = vadd.f32 %v3487_v0, %v2090_v23  ;;  %v1988_v49 = vadd.f32 %v1956_v45, %v1917_v11  ;;  %v2970_v41 = vpop.f32.mrf.mxu0  ;;  %v1442_v23 = vld [vmem:[#allocation2 + $0x72] sm:$0xff] }
 0x126   : > { %v1641_v21 = vadd.f32 %v1609_v4, %v1538_v19  ;;  %v1240_v59 = vsel %vm3720_vm15, %v3766_v28, 0.0  ;;  %v3783_v62 = vadd.f32 %v1509_v47, %v1408_v35  ;;  %v1377_v9 = vmul.f32 %v3220_v46, %v1340_v43 }
 0x127   : > { %v1783_v18 = vmul.f32 %v3398_v8, %v1746_v39  ;;  %v667_v61 = vmax.f32 %v613_v34, 0.0  ;;  %2602 = vrot.lane.b32.xlu0 %v613_v34, %s3061_s27  ;;  %v2161_v13 = vmax.f32 %v2129_v48, 0.0  ;;  %v2091_v25 = vadd.f32 %v2059_v22, %v1988_v49 }
 0x128   : > { %v1712_v20 = vadd.f32 %v1680_v17, %v1641_v21  ;;  %v2023_v4 = vsel %vm3690_vm14, %v3776_v31, 0.0  ;;  %v1611_v15 = vmul.f32 %v3331_v56, %v1207_v14  ;;  %v1277_v47 = vmul.f32 %v3215_v44, %v1240_v59 }
 0x129   : > { %707 = vst.msk [vmem:[#allocation2 + $0xe1] sm:$0xff] %vm673_vm1, %v667_v61  ;;  %v1378_v60 = vmul.f32 %v3220_v46, %v1341_v57  ;;  %v1610_v3 = vmul.f32 %v3331_v56, %v1573_v5  ;;  %v4635_v26 = vand.u32 15, %v3303_v32  ;;  %2992 = vmatmul.mubr.msk.f32.gmra.mxu1 %vm673_vm1, %v2161_v13  ;;  %v2130_v37 = vadd.f32 %v3487_v0, %v2091_v25  ;;  %v1342_v13 = vld [vmem:[#allocation2 + $0x79] sm:$0xff] }
 0x12a   : > { %v3804_v17 = vadd.f32 %v1377_v9, %v1276_v54  ;;  %v1815_v45 = vadd.f32 %v1783_v18, %v1712_v20  ;;  %v1886_v44 = vmul.f32 %v3416_v24, %v1207_v14  ;;  %v1682_v46 = vmul.f32 %v3389_v55, %v1340_v43 }
 0x12b   : > { %vm3798_vm2 = vcmp.ge.s32.totalorder %v4635_v26, 1  ;;  %v1957_v5 = vmul.f32 %v3449_v40, %v1340_v43  ;;  %v2060_v32 = vmul.f32 %v3454_v36, %v2023_v4  ;;  %v1642_v11 = vadd.f32 %v1610_v3, %v3698_v58 }
 0x12c   : > { %v2162_v19 = vmax.f32 %v2130_v37, 0.0  ;;  %v1918_v39 = vadd.f32 %v1886_v44, %v1815_v45  ;;  %v1850_v22 = vsel %vm3572_vm11, %v3766_v28, 0.0  ;;  %v628_v54 = vadd.f32 %v2970_v41, %v3233_v52  ;;  %v3826_v52 = vld [vmem:[%s4588_s3 + $0x2] ss:$0 sm:$0xff]  ;;  %v3866_v45 = vld [vmem:[%s4588_s3 + $0x1] ss:$0 sm:$0xff] }
 0x12d   : > { %v1410_v34 = vadd.f32 %v1378_v60, %v1277_v47  ;;  %v1511_v14 = vmul.f32 %v3228_v51, %v1442_v23  ;;  %v1713_v48 = vadd.f32 %v1681_v12, %v1642_v11  ;;  %v1471_v43 = vsel %vm3755_vm0, %v3713_v27, 0.0  ;;  %v622_v12 = vpop.f32.mrf.mxu0  ;;  %v3859_v41 = vld [vmem:[#allocation2 + $0x80] sm:$0xff] }
 0x12e   : > { %2994 = vmatprep.mubr.msk.f32.mxu1 %vm673_vm1, %v2162_v19  ;;  %v1989_v49 = vadd.f32 %v1957_v5, %v1918_v39  ;;  %v1575_v58 = vsel %vm3661_vm13, %v3766_v28, 0.0  ;;  %v670_v21 = vmax.f32 %v628_v54, 0.0  ;;  %v1508_v51 = vmul.f32 %v3826_v52, %v1471_v43  ;;  %2608 = vrot.lane.b32.xlu1 %v628_v54, %s3061_s27  ;;  %v3869_v5 = vld [vmem:[#allocation2 + $0x7a] sm:$0xff] }
 0x12f   : > { %v4638_v59 = vand.u32 15, %v3298_v29  ;;  %v1683_v28 = vmul.f32 %v3389_v55, %v1341_v57  ;;  %v1786_v9 = vmul.f32 %v3398_v8, %v1442_v23  ;;  %v1816_v18 = vadd.f32 %v1784_v6, %v1713_v48  ;;  %v3850_v6 = vld [vmem:[%s4588_s3] ss:$0 sm:$0xff] }
 0x130   : > { %v1887_v61 = vmul.f32 %v3416_v24, %v1850_v22  ;;  %v2092_v25 = vadd.f32 %v2060_v32, %v1989_v49  ;;  %v1958_v20 = vmul.f32 %v3449_v40, %v1341_v57  ;;  %710 = vst.msk [vmem:[#allocation2 + $0xf9] sm:$0xff] %vm673_vm1, %v670_v21  ;;  %v1540_v29 = vadd.f32 %v1508_v51, %v3728_v7  ;;  %v3856_v57 = vld [vmem:[%s4587_s2] ss:$0 sm:$0xff] }
 0x131   : > { %vm3831_vm3 = vcmp.lt.s32.totalorder %v4638_v59, 15  ;;  %v1748_v4 = vsel %vm3755_vm0, %v3776_v31, 0.0  ;;  %v3845_v47 = vadd.f32 %v1511_v14, %v1410_v34  ;;  %v1278_v3 = vmul.f32 %v3850_v6, %v1209_v38 }
 0x132   : > { %v1919_v60 = vadd.f32 %v1887_v61, %v1816_v18  ;;  %v623_v7 = vadd.f32 %v3856_v57, %v622_v12  ;;  %v2131_v26 = vadd.f32 %v3487_v0, %v2092_v25  ;;  %v2061_v37 = vmul.f32 %v3454_v36, %v1442_v23  ;;  %v2973_v12 = vpop.f32.mrf.mxu0  ;;  %v1444_v18 = vld [vmem:[#allocation2 + $0x82] sm:$0xff] }
 0x133   : > { %v1379_v44 = vmul.f32 %v3866_v45, %v1342_v13  ;;  %v1643_v32 = vadd.f32 %v1611_v15, %v1540_v29  ;;  %v4641_v11 = vand.u32 15, %v3320_v50  ;;  %v3878_v22 = vmul.f32 %v3331_v56, %v1209_v38  ;;  %v1343_v50 = vld [vmem:[#allocation2 + $0x81] sm:$0xff] }
 0x134   : > { %v1990_v39 = vadd.f32 %v1958_v20, %v1919_v60  ;;  %v1785_v23 = vmul.f32 %v3398_v8, %v1748_v4  ;;  %v669_v54 = vmax.f32 %v623_v7, 0.0  ;;  %2606 = vrot.lane.b32.xlu0 %v623_v7, %s3061_s27  ;;  %v2163_v34 = vmax.f32 %v2131_v26, 0.0 }
 0x135   : > { %vm3873_vm4 = vcmp.ge.s32.totalorder %v4641_v11, 1  ;;  %v1714_v14 = vadd.f32 %v1682_v46, %v1643_v32  ;;  %v1242_v15 = vsel %vm3798_vm2, %v3859_v41, 0.0  ;;  %v1612_v48 = vmul.f32 %v3331_v56, %v1575_v58  ;;  %v632_v32 = vpop.f32.mrf.mxu0  ;;  %v3911_v11 = vld [vmem:[#allocation2 + $0x90] sm:$0xff] }
 0x136   : > { %v2093_v43 = vadd.f32 %v2061_v37, %v1990_v39  ;;  %v3886_v49 = vadd.f32 %v1379_v44, %v1278_v3  ;;  %v1684_v21 = vmul.f32 %v3389_v55, %v1342_v13  ;;  %v2025_v51 = vsel %vm3755_vm0, %v3869_v5, 0.0  ;;  %709 = vst.msk [vmem:[#allocation2 + $0xf1] sm:$0xff] %vm673_vm1, %v669_v54  ;;  %2995 = vmatmul.mubr.msk.f32.gmra.mxu1 %vm673_vm1, %v2163_v34  ;;  %v1211_v34 = vld [vmem:[#allocation2 + $0x88] sm:$0xff] }
 0x137   : > { %v1817_v46 = vadd.f32 %v1785_v23, %v1714_v14  ;;  %v1888_v59 = vmul.f32 %v3416_v24, %v1209_v38  ;;  %v1644_v56 = vadd.f32 %v1612_v48, %v3783_v62  ;;  %v1852_v58 = vsel %vm3661_vm13, %v3859_v41, 0.0  ;;  %v1344_v48 = vld [vmem:[#allocation2 + $0x89] sm:$0xff] }
 0x138   : > { %v2132_v61 = vadd.f32 %v3487_v0, %v2093_v43  ;;  %v1959_v10 = vmul.f32 %v3449_v40, %v1342_v13  ;;  %v1279_v25 = vmul.f32 %v3850_v6, %v1242_v15  ;;  %v1380_v20 = vmul.f32 %v3866_v45, %v1343_v50 }
 0x139   : > { %v1920_v29 = vadd.f32 %v1888_v59, %v1817_v46  ;;  %v2062_v4 = vmul.f32 %v3454_v36, %v2025_v51  ;;  %v1715_v60 = vadd.f32 %v1683_v28, %v1644_v56  ;;  %v638_v38 = vadd.f32 %v3856_v57, %v2973_v12  ;;  %v1345_v51 = vld [vmem:[#allocation2 + $0x91] sm:$0xff] }
 0x13a   : > { %v2164_v3 = vmax.f32 %v2132_v61, 0.0  ;;  %v1513_v62 = vmul.f32 %v3826_v52, %v1444_v18  ;;  %v1889_v30 = vmul.f32 %v3416_v24, %v1852_v58  ;;  %v1473_v7 = vsel %vm3831_vm3, %v3776_v31, 0.0  ;;  %v3947_v61 = vld [vmem:[#allocation2 + $0x8a] sm:$0xff] }
 0x13b   : > { %v1991_v13 = vadd.f32 %v1959_v10, %v1920_v29  ;;  %v1818_v26 = vadd.f32 %v1786_v9, %v1715_v60  ;;  %v672_v37 = vmax.f32 %v638_v38, 0.0  ;;  %v1510_v44 = vmul.f32 %v3826_v52, %v1473_v7  ;;  %2612 = vrot.lane.b32.xlu1 %v638_v38, %s3061_s27 }
 0x13c   : > { %v4644_v28 = vand.u32 15, %v3306_v33  ;;  %2997 = vmatprep.mubr.msk.f32.mxu1 %vm673_vm1, %v2164_v3  ;;  %v1412_v23 = vadd.f32 %v1380_v20, %v1279_v25  ;;  %v1577_v31 = vsel %vm3720_vm15, %v3859_v41, 0.0  ;;  %v1685_v9 = vmul.f32 %v3389_v55, %v1343_v50 }
 0x13d   : > { %v3926_v54 = vmul.f32 %v3398_v8, %v1444_v18  ;;  %v2094_v33 = vadd.f32 %v2062_v4, %v1991_v13  ;;  %v1921_v14 = vadd.f32 %v1889_v30, %v1818_v26  ;;  %v1960_v15 = vmul.f32 %v3449_v40, %v1343_v50  ;;  %712 = vst.msk [vmem:[#allocation2 + $0x109] sm:$0xff] %vm673_vm1, %v672_v37 }
 0x13e   : > { %vm3915_vm5 = vcmp.lt.s32.totalorder %v4644_v28, 15  ;;  %v1542_v43 = vadd.f32 %v1510_v44, %v3804_v17  ;;  %v2063_v12 = vmul.f32 %v3454_v36, %v1444_v18  ;;  %v1750_v41 = vsel %vm3831_vm3, %v3869_v5, 0.0  ;;  %v1446_v44 = vld [vmem:[#allocation2 + $0x92] sm:$0xff] }
 0x13f   : > { %v633_v46 = vadd.f32 %v3856_v57, %v632_v32  ;;  %v1244_v59 = vsel %vm3873_vm4, %v3911_v11, 0.0  ;;  %v4647_v50 = vand.u32 15, %v3340_v63  ;;  %v2133_v17 = vadd.f32 %v3487_v0, %v2094_v33 }
 0x140   : > { %v1992_v58 = vadd.f32 %v1960_v15, %v1921_v14  ;;  %v1280_v18 = vmul.f32 %v3850_v6, %v1211_v34  ;;  %v1645_v10 = vadd.f32 %v3878_v22, %v1542_v43  ;;  %v1381_v57 = vmul.f32 %v3866_v45, %v1344_v48  ;;  %v3960_v22 = vld [vmem:[%s4588_s3 + $0x3] ss:$0 sm:$0xff] }
 0x141   : > { %vm3941_vm6 = vcmp.ge.s32.totalorder %v4647_v50, 1  ;;  %v671_v25 = vmax.f32 %v633_v46, 0.0  ;;  %v1281_v20 = vmul.f32 %v3850_v6, %v1244_v59  ;;  %v1382_v63 = vmul.f32 %v3866_v45, %v1345_v51  ;;  %2610 = vrot.lane.b32.xlu0 %v633_v46, %s3061_s27 }
 0x142   : > { %v2165_v29 = vmax.f32 %v2133_v17, 0.0  ;;  %v2095_v4 = vadd.f32 %v2063_v12, %v1992_v58  ;;  %v1716_v60 = vadd.f32 %v1684_v21, %v1645_v10  ;;  %v1787_v38 = vmul.f32 %v3398_v8, %v1750_v41  ;;  %v3993_v41 = vld [vmem:[#allocation2 + $0xa0] sm:$0xff] }
 0x143   : > { %v3955_v3 = vadd.f32 %v1513_v62, %v1412_v23  ;;  %v1615_v30 = vmul.f32 %v3960_v22, %v1211_v34  ;;  %v2027_v7 = vsel %vm3831_vm3, %v3947_v61, 0.0  ;;  %711 = vst.msk [vmem:[#allocation2 + $0x101] sm:$0xff] %vm673_vm1, %v671_v25  ;;  %v1614_v13 = vmul.f32 %v3960_v22, %v1577_v31  ;;  %v1347_v10 = vld [vmem:[#allocation2 + $0xa1] sm:$0xff] }
 0x144   : > { %2998 = vmatmul.mubr.msk.f32.gmra.mxu1 %vm673_vm1, %v2165_v29  ;;  %v2134_v21 = vadd.f32 %v3487_v0, %v2095_v4  ;;  %v3970_v62 = vadd.f32 %v1381_v57, %v1280_v18  ;;  %v1819_v26 = vadd.f32 %v1787_v38, %v1716_v60  ;;  %v1890_v37 = vmul.f32 %v3416_v24, %v1211_v34  ;;  %v4022_v4 = vld [vmem:[#allocation2 + $0x9a] sm:$0xff] }
 0x145   : > { %v1686_v32 = vmul.f32 %v3389_v55, %v1344_v48  ;;  %v1961_v28 = vmul.f32 %v3449_v40, %v1344_v48  ;;  %v1414_v27 = vadd.f32 %v1382_v63, %v1281_v20  ;;  %v1646_v23 = vadd.f32 %v1614_v13, %v3845_v47 }
 0x146   : > { %v2166_v33 = vmax.f32 %v2134_v21, 0.0  ;;  %v1922_v14 = vadd.f32 %v1890_v37, %v1819_v26  ;;  %v2064_v31 = vmul.f32 %v3454_v36, %v2027_v7  ;;  %v1854_v15 = vsel %vm3720_vm15, %v3911_v11, 0.0 }
 0x147   : > { %v4650_v43 = vand.u32 15, %v3323_v53  ;;  %v1515_v55 = vmul.f32 %v3826_v52, %v1446_v44  ;;  %v1579_v47 = vsel %vm3798_vm2, %v3911_v11, 0.0  ;;  %v1717_v48 = vadd.f32 %v1685_v9, %v1646_v23  ;;  %v1213_v11 = vld [vmem:[#allocation2 + $0x98] sm:$0xff] }
 0x148   : > { %v1475_v12 = vsel %vm3915_vm5, %v3869_v5, 0.0  ;;  %3000 = vmatprep.mubr.msk.f32.mxu1 %vm673_vm1, %v2166_v33  ;;  %v1993_v53 = vadd.f32 %v1961_v28, %v1922_v14  ;;  %v1687_v46 = vmul.f32 %v3999_v16, %v1345_v51  ;;  %v1790_v59 = vmul.f32 %v3398_v8, %v1446_v44  ;;  %v1346_v9 = vld [vmem:[#allocation2 + $0x99] sm:$0xff]  ;;  %v4036_v28 = vld [vmem:[%s4588_s3 + $0x5] ss:$0 sm:$0xff]  ;;  %v4047_v14 = vld [vmem:[%s4588_s3 + $0x6] ss:$0 sm:$0xff] }
 0x149   : > { %vm3982_vm7 = vcmp.lt.s32.totalorder %v4650_v43, 15  ;;  %v1512_v50 = vmul.f32 %v3826_v52, %v1475_v12  ;;  %v4004_v17 = vadd.f32 %v1515_v55, %v1414_v27  ;;  %v1820_v5 = vadd.f32 %v3926_v54, %v1717_v48  ;;  %v4060_v12 = vld [vmem:[%s4588_s3 + $0x8] ss:$0 sm:$0xff] }
 0x14a   : > { %v1891_v58 = vmul.f32 %v3416_v24, %v1854_v15  ;;  %v1962_v18 = vmul.f32 %v3449_v40, %v1345_v51  ;;  %v2096_v57 = vadd.f32 %v2064_v31, %v1993_v53  ;;  %v2065_v25 = vmul.f32 %v3454_v36, %v1446_v44  ;;  %v1448_v31 = vld [vmem:[#allocation2 + $0xa2] sm:$0xff] }
 0x14b   : > { %v1544_v20 = vadd.f32 %v1512_v50, %v3886_v49  ;;  %v1246_v8 = vsel %vm3941_vm6, %v3993_v41, 0.0  ;;  %v4653_v63 = vand.u32 15, %v3343_v1  ;;  %v1282_v24 = vmul.f32 %v3850_v6, %v1213_v11  ;;  %v4071_v50 = vld [vmem:[#allocation2 + $0xb0] sm:$0xff] }
 0x14c   : > { %v1923_v54 = vadd.f32 %v1891_v58, %v1820_v5  ;;  %v1383_v51 = vmul.f32 %v3866_v45, %v1346_v9  ;;  %v1752_v36 = vsel %vm3915_vm5, %v3947_v61, 0.0  ;;  %v2135_v49 = vadd.f32 %v3487_v0, %v2096_v57 }
 0x14d   : > { %vm4016_vm8 = vcmp.ge.s32.totalorder %v4653_v63, 1  ;;  %v1647_v60 = vadd.f32 %v1615_v30, %v1544_v20  ;;  %v1283_v1 = vmul.f32 %v3850_v6, %v1246_v8  ;;  %v1384_v38 = vmul.f32 %v3866_v45, %v1347_v10  ;;  %v1348_v63 = vld [vmem:[#allocation2 + $0xa9] sm:$0xff] }
 0x14e   : > { %v1994_v7 = vadd.f32 %v1962_v18, %v1923_v54  ;;  %v1617_v13 = vmul.f32 %v3960_v22, %v1213_v11  ;;  %v1688_v21 = vmul.f32 %v3999_v16, %v1346_v9  ;;  %v1616_v26 = vmul.f32 %v3960_v22, %v1579_v47 }
 0x14f   : > { %v2167_v37 = vmax.f32 %v2135_v49, 0.0  ;;  %v1718_v44 = vadd.f32 %v1686_v32, %v1647_v60  ;;  %v1789_v30 = vmul.f32 %v4036_v28, %v1752_v36  ;;  %v2029_v27 = vsel %vm3915_vm5, %v4022_v4, 0.0 }
 0x150   : > { %v2097_v23 = vadd.f32 %v2065_v25, %v1994_v7  ;;  %v4042_v33 = vadd.f32 %v1383_v51, %v1282_v24  ;;  %v1892_v32 = vmul.f32 %v4047_v14, %v1213_v11  ;;  %v1648_v15 = vadd.f32 %v1616_v26, %v3955_v3  ;;  %v1215_v25 = vld [vmem:[#allocation2 + $0xa8] sm:$0xff]  ;;  %v4089_v51 = vld [vmem:[%s4588_s3 + $0x7] ss:$0 sm:$0xff] }
 0x151   : > { %3001 = vmatmul.mubr.msk.f32.gmra.mxu1 %vm673_vm1, %v2167_v37  ;;  %v1821_v43 = vadd.f32 %v1789_v30, %v1718_v44  ;;  %v1963_v55 = vmul.f32 %v3449_v40, %v1346_v9  ;;  %v1416_v39 = vadd.f32 %v1384_v38, %v1283_v1  ;;  %v1856_v47 = vsel %vm3798_vm2, %v3993_v41, 0.0  ;;  %v4100_v38 = vld [vmem:[#allocation2 + $0xaa] sm:$0xff] }
 0x152   : > { %v2136_v48 = vadd.f32 %v3487_v0, %v2097_v23  ;;  %v2066_v53 = vmul.f32 %v4060_v12, %v2029_v27  ;;  %v1719_v3 = vadd.f32 %v1687_v46, %v1648_v15  ;;  %v1477_v11 = vsel %vm3982_vm7, %v3947_v61, 0.0  ;;  %v4114_v23 = vld [vmem:[%s4589_s4] ss:$0 sm:$0xff] }
 0x153   : > { %v1924_v40 = vadd.f32 %v1892_v32, %v1821_v43  ;;  %v1517_v9 = vmul.f32 %v3826_v52, %v1448_v31  ;;  %v1581_v35 = vsel %vm3873_vm4, %v3993_v41, 0.0  ;;  %v1514_v0 = vmul.f32 %v3826_v52, %v1477_v11 }
 0x154   : > { %v4656_v5 = vand.u32 15, %v3346_v2  ;;  %v2168_v46 = vmax.f32 %v2136_v48, 0.0  ;;  %v1689_v61 = vmul.f32 %v3999_v16, %v1347_v10  ;;  %v1822_v18 = vadd.f32 %v1790_v59, %v1719_v3  ;;  %v1349_v2 = vld [vmem:[#allocation2 + $0xb1] sm:$0xff] }
 0x155   : > { %v1893_v57 = vmul.f32 %v4047_v14, %v1856_v47  ;;  %v1995_v20 = vadd.f32 %v1963_v55, %v1924_v40  ;;  %v4081_v8 = vadd.f32 %v1517_v9, %v1416_v39  ;;  %v1792_v41 = vmul.f32 %v4036_v28, %v1448_v31  ;;  %v1450_v3 = vld [vmem:[#allocation2 + $0xb2] sm:$0xff] }
 0x156   : > { %vm4075_vm9 = vcmp.lt.s32.totalorder %v4656_v5, 15  ;;  %v1546_v54 = vadd.f32 %v1514_v0, %v3970_v62  ;;  %3003 = vmatprep.mubr.msk.f32.mxu1 %vm673_vm1, %v2168_v46  ;;  %v1964_v59 = vmul.f32 %v4089_v51, %v1347_v10  ;;  %v1754_v36 = vsel %vm3982_vm7, %v4022_v4, 0.0 }
 0x157   : > { %v1925_v24 = vadd.f32 %v1893_v57, %v1822_v18  ;;  %v1248_v49 = vsel %vm4016_vm8, %v4071_v50, 0.0  ;;  %v2098_v62 = vadd.f32 %v2066_v53, %v1995_v20  ;;  %v2067_v60 = vmul.f32 %v4060_v12, %v1448_v31  ;;  %v4662_v18 = vld [vmem:[#allocation4_spill] sm:$0xff] }
 0x158   : > { %v1284_v1 = vmul.f32 %v3850_v6, %v1215_v25  ;;  %v1649_v7 = vadd.f32 %v1617_v13, %v1546_v54  ;;  %v4659_v26 = vand.u32 15, %v3367_v42  ;;  %v1385_v44 = vmul.f32 %v3866_v45, %v1348_v63 }
 0x159   : > { %v1996_v37 = vadd.f32 %v1964_v59, %v1925_v24  ;;  %v1285_v30 = vmul.f32 %v3850_v6, %v1248_v49  ;;  %v1386_v27 = vmul.f32 %v3866_v45, %v1349_v2  ;;  %v2137_v13 = vadd.f32 %v4114_v23, %v2098_v62  ;;  %v1217_v59 = vld [vmem:[#allocation2 + $0xb8] sm:$0xff]  ;;  %v4150_v62 = vld [vmem:[#allocation2 + $0xc0] sm:$0xff] }
 0x15a   : > { %vm4104_vm10 = vcmp.ge.s32.totalorder %v4659_v26, 1  ;;  %v1720_v32 = vadd.f32 %v1688_v21, %v1649_v7  ;;  %v1791_v42 = vmul.f32 %v4036_v28, %v1754_v36  ;;  %v1618_v31 = vmul.f32 %v3960_v22, %v1581_v35  ;;  %v1350_v36 = vld [vmem:[#allocation2 + $0xb9] sm:$0xff] }
 0x15b   : > { %v2099_v15 = vadd.f32 %v2067_v60, %v1996_v37  ;;  %v1619_v43 = vmul.f32 %v3960_v22, %v1215_v25  ;;  %v1690_v55 = vmul.f32 %v3999_v16, %v1348_v63  ;;  %v2031_v39 = vsel %vm3982_vm7, %v4100_v38, 0.0  ;;  %v4158_v26 = vld [vmem:[#allocation2 + $0xba] sm:$0xff] }
 0x15c   : > { %v2169_v47 = vmax.f32 %v2137_v13, 0.0  ;;  %v1823_v48 = vadd.f32 %v1791_v42, %v1720_v32  ;;  %v1894_v53 = vmul.f32 %v4047_v14, %v1215_v25  ;;  %v1650_v21 = vadd.f32 %v1618_v31, %v4004_v17 }
 0x15d   : > { %v2138_v11 = vadd.f32 %v4114_v23, %v2099_v15  ;;  %v4127_v40 = vadd.f32 %v1385_v44, %v1284_v1  ;;  %v1418_v9 = vadd.f32 %v1386_v27, %v1285_v30  ;;  %v1858_v35 = vsel %vm3873_vm4, %v4071_v50, 0.0  ;;  %v1351_v30 = vld [vmem:[#allocation2 + $0xc1] sm:$0xff] }
 0x15e   : > { %3004 = vmatmul.mubr.msk.f32.gmra.mxu1 %vm673_vm1, %v2169_v47  ;;  %v1926_v34 = vadd.f32 %v1894_v53, %v1823_v48  ;;  %v1965_v0 = vmul.f32 %v4089_v51, %v1348_v63  ;;  %v2068_v5 = vmul.f32 %v4060_v12, %v2031_v39  ;;  %v1721_v46 = vadd.f32 %v1689_v61, %v1650_v21 }
 0x15f   : > { %v4663_v57 = vand.u32 15, %v4662_v18  ;;  %v2170_v25 = vmax.f32 %v2138_v11, 0.0  ;;  %v1519_v20 = vmul.f32 %v3826_v52, %v1450_v3  ;;  %v1583_v19 = vsel %vm3941_vm6, %v4071_v50, 0.0 }
 0x160   : > { %v1479_v63 = vsel %vm4075_vm9, %v4022_v4, 0.0  ;;  %v1997_v54 = vadd.f32 %v1965_v0, %v1926_v34  ;;  %v1824_v24 = vadd.f32 %v1792_v41, %v1721_v46  ;;  %v1895_v61 = vmul.f32 %v4047_v14, %v1858_v35  ;;  %v1452_v35 = vld [vmem:[#allocation2 + $0xc2] sm:$0xff] }
 0x161   : > { %vm4137_vm11 = vcmp.lt.s32.totalorder %v4663_v57, 15  ;;  %v1516_v49 = vmul.f32 %v3826_v52, %v1479_v63  ;;  %3006 = vmatprep.mubr.msk.f32.mxu1 %vm673_vm1, %v2170_v25  ;;  %v4153_v60 = vadd.f32 %v1519_v20, %v1418_v9  ;;  %v1691_v50 = vmul.f32 %v3999_v16, %v1349_v2 }
 0x162   : > { %v1794_v1 = vmul.f32 %v4036_v28, %v1450_v3  ;;  %v1966_v4 = vmul.f32 %v4089_v51, %v1349_v2  ;;  %v2100_v7 = vadd.f32 %v2068_v5, %v1997_v54  ;;  %v1927_v41 = vadd.f32 %v1895_v61, %v1824_v24 }
 0x163   : > { %v1548_v37 = vadd.f32 %v1516_v49, %v4042_v33  ;;  %v1756_v44 = vsel %vm4075_vm9, %v4100_v38, 0.0  ;;  %v2069_v27 = vmul.f32 %v4060_v12, %v1450_v3  ;;  %v1286_v13 = vmul.f32 %v3850_v6, %v1217_v59  ;;  %v1219_v49 = vld [vmem:[#allocation2 + $0xc8] sm:$0xff] }
 0x164   : > { %v1387_v32 = vmul.f32 %v3866_v45, %v1350_v36  ;;  %v1250_v2 = vsel %vm4104_vm10, %v4150_v62, 0.0  ;;  %v2139_v42 = vadd.f32 %v4114_v23, %v2100_v7  ;;  %v1998_v31 = vadd.f32 %v1966_v4, %v1927_v41  ;;  %v1352_v7 = vld [vmem:[#allocation2 + $0xc9] sm:$0xff] }
 0x165   : > { %v1621_v33 = vmul.f32 %v3960_v22, %v1217_v59  ;;  %v1651_v15 = vadd.f32 %v1619_v43, %v1548_v37  ;;  %v1793_v39 = vmul.f32 %v4036_v28, %v1756_v44  ;;  %v2033_v47 = vsel %vm4075_vm9, %v4158_v26, 0.0 }
 0x166   : > { %v1388_v48 = vmul.f32 %v3866_v45, %v1351_v30  ;;  %v1620_v53 = vmul.f32 %v3960_v22, %v1583_v19  ;;  %v2171_v3 = vmax.f32 %v2139_v42, 0.0  ;;  %v2101_v21 = vadd.f32 %v2069_v27, %v1998_v31  ;;  %v4213_v42 = vld [vmem:[#allocation2 + $0xca] sm:$0xff] }
 0x167   : > { %v1722_v11 = vadd.f32 %v1690_v55, %v1651_v15  ;;  %v1287_v9 = vmul.f32 %v3850_v6, %v1250_v2  ;;  %v4179_v34 = vadd.f32 %v1387_v32, %v1286_v13  ;;  %v1692_v43 = vmul.f32 %v3999_v16, %v1350_v36 }
 0x168   : > { %v1896_v0 = vmul.f32 %v4047_v14, %v1217_v59  ;;  %v1652_v5 = vadd.f32 %v1620_v53, %v4081_v8  ;;  %3007 = vmatmul.mubr.msk.f32.gmra.mxu1 %vm673_vm1, %v2171_v3  ;;  %v2140_v58 = vadd.f32 %v4114_v23, %v2101_v21  ;;  %v1967_v18 = vmul.f32 %v4089_v51, %v1350_v36  ;;  %v1353_v21 = vld [vmem:[#allocation2 + $0xd1] sm:$0xff] }
 0x169   : > { %v1825_v46 = vadd.f32 %v1793_v39, %v1722_v11  ;;  %v1860_v55 = vsel %vm3941_vm6, %v4150_v62, 0.0  ;;  %v2070_v57 = vmul.f32 %v4060_v12, %v2033_v47  ;;  %v1521_v25 = vmul.f32 %v3826_v52, %v1452_v35  ;;  %v4219_v47 = vld [vmem:[#allocation2 + $0xd0] sm:$0xff] }
 0x16a   : > { %v1723_v20 = vadd.f32 %v1691_v50, %v1652_v5  ;;  %v1481_v8 = vsel %vm4137_vm11, %v4100_v38, 0.0  ;;  %v2172_v19 = vmax.f32 %v2140_v58, 0.0  ;;  %v1420_v54 = vadd.f32 %v1388_v48, %v1287_v9 }
 0x16b   : > { %v1928_v63 = vadd.f32 %v1896_v0, %v1825_v46  ;;  %v1518_v24 = vmul.f32 %v3826_v52, %v1481_v8  ;;  %v1585_v61 = vsel %vm4016_vm8, %v4150_v62, 0.0  ;;  %v1693_v56 = vmul.f32 %v3999_v16, %v1351_v30  ;;  %v1454_v8 = vld [vmem:[#allocation2 + $0xd2] sm:$0xff] }
 0x16c   : > { %v1826_v59 = vadd.f32 %v1794_v1, %v1723_v20  ;;  %v1897_v36 = vmul.f32 %v4047_v14, %v1860_v55  ;;  %3009 = vmatprep.mubr.msk.f32.mxu1 %vm673_vm1, %v2172_v19  ;;  %v1796_v38 = vmul.f32 %v4036_v28, %v1452_v35  ;;  %v1968_v4 = vmul.f32 %v4089_v51, %v1351_v30  ;;  %v4666_v1 = vld [vmem:[#allocation3_spill] sm:$0xff] }
 0x16d   : > { %v1999_v50 = vadd.f32 %v1967_v18, %v1928_v63  ;;  %v1550_v41 = vadd.f32 %v1518_v24, %v4127_v40  ;;  %v2071_v44 = vmul.f32 %v4060_v12, %v1452_v35  ;;  %v1758_v62 = vsel %vm4137_vm11, %v4158_v26, 0.0 }
 0x16e   : > { %v1929_v37 = vadd.f32 %v1897_v36, %v1826_v59  ;;  %v740_v27 = vadd.s32 208, %v4666_v1  ;;  %v4210_v32 = vadd.f32 %v1521_v25, %v1420_v54  ;;  %v1288_v2 = vmul.f32 %v3850_v6, %v1219_v49 }
 0x16f   : > { %v2102_v13 = vadd.f32 %v2070_v57, %v1999_v50  ;;  %v1653_v30 = vadd.f32 %v1621_v33, %v1550_v41  ;;  %v1389_v40 = vmul.f32 %v3866_v45, %v1352_v7  ;;  %v4217_v15 = vmul.f32 %v3960_v22, %v1219_v49  ;;  %v1221_v50 = vld [vmem:[#allocation2 + $0xd8] sm:$0xff] }
 0x170   : > { %v2000_v31 = vadd.f32 %v1968_v4, %v1929_v37  ;;  %v932_v39 = vand.u32 15, %v740_v27  ;;  %v1795_v3 = vmul.f32 %v4036_v28, %v1758_v62  ;;  %v1622_v11 = vmul.f32 %v3960_v22, %v1585_v61  ;;  %v1354_v27 = vld [vmem:[#allocation2 + $0xd9] sm:$0xff] }
 0x171   : > { %v2141_v48 = vadd.f32 %v4114_v23, %v2102_v13  ;;  %v1724_v53 = vadd.f32 %v1692_v43, %v1653_v30  ;;  %v1898_v33 = vmul.f32 %v4047_v14, %v1219_v49  ;;  %v2035_v35 = vsel %vm4137_vm11, %v4213_v42, 0.0 }
 0x172   : > { %v2103_v9 = vadd.f32 %v2071_v44, %v2000_v31  ;;  %vm4228_vm12 = vcmp.ge.s32.totalorder %v932_v39, 1  ;;  %v1654_v46 = vadd.f32 %v1622_v11, %v4153_v60  ;;  %v1390_v57 = vmul.f32 %v3866_v45, %v1353_v21 }
 0x173   : > { %v2173_v5 = vmax.f32 %v2141_v48, 0.0  ;;  %v1827_v58 = vadd.f32 %v1795_v3, %v1724_v53  ;;  %v1252_v43 = vsel %vm4228_vm12, %v4219_v47, 0.0  ;;  %v1862_v17 = vsel %vm4016_vm8, %v4219_v47, 0.0 }
 0x174   : > { %v2142_v18 = vadd.f32 %v4114_v23, %v2103_v9  ;;  %v1289_v55 = vmul.f32 %v3850_v6, %v1252_v43  ;;  %v1969_v20 = vmul.f32 %v4089_v51, %v1352_v7  ;;  %v1725_v19 = vadd.f32 %v1693_v56, %v1654_v46  ;;  %v1355_v43 = vld [vmem:[#allocation2 + $0xe1] sm:$0xff] }
 0x175   : > { %3010 = vmatmul.mubr.msk.f32.gmra.mxu1 %vm673_vm1, %v2173_v5  ;;  %v1930_v25 = vadd.f32 %v1898_v33, %v1827_v58  ;;  %v737_v63 = vadd.s32 184, %v4666_v1  ;;  %v4245_v54 = vadd.f32 %v1389_v40, %v1288_v2  ;;  %v1694_v24 = vmul.f32 %v3999_v16, %v1352_v7 }
 0x176   : > { %v2174_v60 = vmax.f32 %v2142_v18, 0.0  ;;  %v2072_v61 = vmul.f32 %v4060_v12, %v2035_v35  ;;  %v1828_v36 = vadd.f32 %v1796_v38, %v1725_v19  ;;  %v1899_v29 = vmul.f32 %v4047_v14, %v1862_v17 }
 0x177   : > { %v2001_v59 = vadd.f32 %v1969_v20, %v1930_v25  ;;  %v911_v49 = vand.u32 15, %v737_v63  ;;  %v1422_v4 = vadd.f32 %v1390_v57, %v1289_v55  ;;  %v1523_v56 = vmul.f32 %v3826_v52, %v1454_v8  ;;  %v1456_v63 = vld [vmem:[#allocation2 + $0xe2] sm:$0xff] }
 0x178   : > { %3012 = vmatprep.mubr.msk.f32.mxu1 %vm673_vm1, %v2174_v60  ;;  %v1587_v41 = vsel %vm4104_vm10, %v4219_v47, 0.0  ;;  %v1695_v37 = vmul.f32 %v3999_v16, %v1353_v21  ;;  %v1931_v44 = vadd.f32 %v1899_v29, %v1828_v36  ;;  %v1970_v62 = vmul.f32 %v4089_v51, %v1353_v21  ;;  %v4273_v21 = vld [vmem:[#allocation2 + $0xda] sm:$0xff] }
 0x179   : > { %v2104_v7 = vadd.f32 %v2072_v61, %v2001_v59  ;;  %vm4257_vm13 = vcmp.lt.s32.totalorder %v911_v49, 15  ;;  %v1798_v13 = vmul.f32 %v4036_v28, %v1454_v8  ;;  %v1290_v2 = vmul.f32 %v3850_v6, %v1221_v50 }
 0x17a   : > { %v1483_v30 = vsel %vm4257_vm13, %v4158_v26, 0.0  ;;  %v742_v31 = vadd.s32 224, %v4666_v1  ;;  %v2002_v39 = vadd.f32 %v1970_v62, %v1931_v44  ;;  %v2073_v47 = vmul.f32 %v4060_v12, %v1454_v8  ;;  %v1222_v26 = vld [vmem:[#allocation2 + $0xe0] sm:$0xff] }
 0x17b   : > { %v2143_v40 = vadd.f32 %v4114_v23, %v2104_v7  ;;  %v1520_v48 = vmul.f32 %v3826_v52, %v1483_v30  ;;  %v4270_v53 = vadd.f32 %v1523_v56, %v1422_v4  ;;  %v1391_v3 = vmul.f32 %v3866_v45, %v1354_v27 }
 0x17c   : > { %v4276_v11 = vmul.f32 %v3960_v22, %v1221_v50  ;;  %v946_v9 = vand.u32 15, %v742_v31  ;;  %v2105_v35 = vadd.f32 %v2073_v47, %v2002_v39  ;;  %v1760_v58 = vsel %vm4257_vm13, %v4213_v42, 0.0 }
 0x17d   : > { %v2175_v33 = vmax.f32 %v2143_v40, 0.0  ;;  %v1552_v5 = vadd.f32 %v1520_v48, %v4179_v34  ;;  %v4282_v46 = vadd.f32 %v1391_v3, %v1290_v2  ;;  %v4285_v18 = vmul.f32 %v3999_v16, %v1354_v27  ;;  %v1356_v2 = vld [vmem:[#allocation2 + $0xe9] sm:$0xff] }
 0x17e   : > { %vm4287_vm14 = vcmp.ge.s32.totalorder %v946_v9, 1  ;;  %v1624_v57 = vmul.f32 %v3960_v22, %v1587_v41  ;;  %v2144_v34 = vadd.f32 %v4114_v23, %v2105_v35  ;;  %v2037_v25 = vsel %vm4257_vm13, %v4273_v21, 0.0 }
 0x17f   : > { %3013 = vmatmul.mubr.msk.f32.gmra.mxu1 %vm673_vm1, %v2175_v33  ;;  %v1655_v17 = vadd.f32 %v4217_v15, %v1552_v5  ;;  %v1254_v20 = vsel %vm4287_vm14, %v1222_v26, 0.0  ;;  %v1797_v8 = vmul.f32 %v4036_v28, %v1760_v58  ;;  %v1392_v19 = vmul.f32 %v3866_v45, %v1355_v43  ;;  %v4329_v33 = vld [vmem:[#allocation2 + $0xea] sm:$0xff] }
 0x180   : > { %v1656_v60 = vadd.f32 %v1624_v57, %v4210_v32  ;;  %v1864_v61 = vsel %vm4104_vm10, %v1222_v26, 0.0  ;;  %v2176_v59 = vmax.f32 %v2144_v34, 0.0  ;;  %v1291_v15 = vmul.f32 %v3850_v6, %v1254_v20  ;;  %v1224_v34 = vld [vmem:[#allocation2 + $0xf0] sm:$0xff] }
 0x181   : > { %v1726_v36 = vadd.f32 %v1694_v24, %v1655_v17  ;;  %v739_v29 = vadd.s32 200, %v4666_v1  ;;  %v1900_v49 = vmul.f32 %v4047_v14, %v1221_v50  ;;  %v1971_v4 = vmul.f32 %v4089_v51, %v1354_v27  ;;  %v1223_v27 = vld [vmem:[#allocation2 + $0xe8] sm:$0xff]  ;;  %v1357_v20 = vld [vmem:[#allocation2 + $0xf1] sm:$0xff] }
 0x182   : > { %v2074_v56 = vmul.f32 %v4060_v12, %v2037_v25  ;;  %v1727_v41 = vadd.f32 %v1695_v37, %v1656_v60  ;;  %3015 = vmatprep.mubr.msk.f32.mxu1 %vm673_vm1, %v2176_v59  ;;  %v1525_v32 = vmul.f32 %v3826_v52, %v1456_v63  ;;  %v1589_v10 = vsel %vm4228_vm12, %v1222_v26, 0.0 }
 0x183   : > { %v1829_v7 = vadd.f32 %v1797_v8, %v1726_v36  ;;  %v925_v24 = vand.u32 15, %v739_v29  ;;  %v1697_v44 = vmul.f32 %v3999_v16, %v1355_v43  ;;  %v1800_v62 = vmul.f32 %v4036_v28, %v1456_v63 }
 0x184   : > { %v1830_v38 = vadd.f32 %v1798_v13, %v1727_v41  ;;  %v1901_v50 = vmul.f32 %v4047_v14, %v1864_v61  ;;  %v1424_v37 = vadd.f32 %v1392_v19, %v1291_v15  ;;  %v744_v40 = vadd.s32 240, %v4666_v1 }
 0x185   : > { %v1932_v30 = vadd.f32 %v1900_v49, %v1829_v7  ;;  %vm4317_vm15 = vcmp.lt.s32.totalorder %v925_v24, 15  ;;  %v1972_v47 = vmul.f32 %v4089_v51, %v1355_v43  ;;  %v2075_v48 = vmul.f32 %v4060_v12, %v1456_v63 }
 0x186   : > { %v1933_v39 = vadd.f32 %v1901_v50, %v1830_v38  ;;  %v1485_v13 = vsel %vm4317_vm15, %v4213_v42, 0.0  ;;  %v1292_v9 = vmul.f32 %v3850_v6, %v1223_v27  ;;  %v1393_v26 = vmul.f32 %v3866_v45, %v1356_v2  ;;  %v1458_v38 = vld [vmem:[#allocation2 + $0xf2] sm:$0xff] }
 0x187   : > { %v2003_v3 = vadd.f32 %v1971_v4, %v1932_v30  ;;  %v1522_v35 = vmul.f32 %v3826_v52, %v1485_v13  ;;  %v4333_v58 = vmul.f32 %v3960_v22, %v1223_v27  ;;  %v4336_v43 = vmul.f32 %v3999_v16, %v1356_v2 }
 0x188   : > { %v2004_v5 = vadd.f32 %v1972_v47, %v1933_v39  ;;  %v960_v57 = vand.u32 15, %v744_v40  ;;  %v1557_v42 = vadd.f32 %v1525_v32, %v1424_v37  ;;  %v1626_v8 = vmul.f32 %v3960_v22, %v1589_v10 }
 0x189   : > { %v2106_v17 = vadd.f32 %v2074_v56, %v2003_v3  ;;  %v1554_v25 = vadd.f32 %v1522_v35, %v4245_v54  ;;  %v1762_v63 = vsel %vm4317_vm15, %v4273_v21, 0.0  ;;  %v2039_v60 = vsel %vm4317_vm15, %v4329_v33, 0.0  ;;  %v1225_v3 = vld [vmem:[#allocation2 + $0xf8] sm:$0xff]  ;;  %v3051_v35 = vld [vmem:[%s4588_s3 + $0x2] ss:$0 sm:$0xff] }
 0x18a   : > { %v2107_v19 = vadd.f32 %v2075_v48, %v2004_v5  ;;  %vm4346_vm0 = vcmp.ge.s32.totalorder %v960_v57, 1  ;;  %v1658_v15 = vadd.f32 %v1626_v8, %v4270_v53  ;;  %v1394_v4 = vmul.f32 %v3866_v45, %v1357_v20 }
 0x18b   : > { %v2145_v59 = vadd.f32 %v4114_v23, %v2106_v17  ;;  %v1657_v54 = vadd.f32 %v4276_v11, %v1554_v25  ;;  %v1256_v36 = vsel %vm4346_vm0, %v1224_v34, 0.0  ;;  %v1866_v56 = vsel %vm4228_vm12, %v1224_v34, 0.0 }
 0x18c   : > { %v2146_v29 = vadd.f32 %v4114_v23, %v2107_v19  ;;  %v1293_v49 = vmul.f32 %v3850_v6, %v1256_v36  ;;  %v1799_v32 = vmul.f32 %v4036_v28, %v1762_v63  ;;  %v1729_v11 = vadd.f32 %v1697_v44, %v1658_v15 }
 0x18d   : > { %v2177_v41 = vmax.f32 %v2145_v59, 0.0  ;;  %v1728_v7 = vadd.f32 %v4285_v18, %v1657_v54  ;;  %v4362_v24 = vadd.f32 %v1393_v26, %v1292_v9  ;;  %v1902_v53 = vmul.f32 %v4047_v14, %v1223_v27  ;;  %v4375_v9 = vld [vmem:[#allocation2 + $0xf9] sm:$0xff] }
 0x18e   : > { %v2178_v10 = vmax.f32 %v2146_v29, 0.0  ;;  %v741_v50 = vadd.s32 216, %v4666_v1  ;;  %v1591_v0 = vsel %vm4287_vm14, %v1224_v34, 0.0  ;;  %v1832_v37 = vadd.f32 %v1800_v62, %v1729_v11 }
 0x18f   : > { %3016 = vmatmul.mubr.msk.f32.gmra.mxu1 %vm673_vm1, %v2177_v41  ;;  %v1831_v30 = vadd.f32 %v1799_v32, %v1728_v7  ;;  %v1903_v18 = vmul.f32 %v4047_v14, %v1866_v56  ;;  %v1973_v44 = vmul.f32 %v4089_v51, %v1356_v2  ;;  %v2076_v31 = vmul.f32 %v4060_v12, %v2039_v60  ;;  %v1561_v2 = vld [vmem:[#allocation2 + $0x100] sm:$0xff] }
 0x190   : > { %3018 = vmatprep.mubr.msk.f32.mxu1 %vm673_vm1, %v2178_v10  ;;  %v1426_v40 = vadd.f32 %v1394_v4, %v1293_v49  ;;  %v939_v27 = vand.u32 15, %v741_v50  ;;  %v1527_v47 = vmul.f32 %v3826_v52, %v1458_v38  ;;  %v1974_v13 = vmul.f32 %v4089_v51, %v1357_v20  ;;  %v1459_v56 = vld [vmem:[#allocation2 + $0xfa] sm:$0xff] }
 0x191   : > { %v1934_v39 = vadd.f32 %v1902_v53, %v1831_v30  ;;  %v1935_v48 = vadd.f32 %v1903_v18, %v1832_v37  ;;  %v1699_v62 = vmul.f32 %v3999_v16, %v1357_v20  ;;  %v1802_v26 = vmul.f32 %v4036_v28, %v1458_v38  ;;  %v1664_v41 = vld [vmem:[#allocation2 + $0x101] sm:$0xff] }
 0x192   : > { %vm4379_vm2 = vcmp.lt.s32.totalorder %v939_v27, 15  ;;  %v1628_v5 = vmul.f32 %v3960_v22, %v1591_v0  ;;  %v2077_v17 = vmul.f32 %v4060_v12, %v1458_v38  ;;  %v1559_v8 = vadd.f32 %v1527_v47, %v1426_v40  ;;  %v1838_v40 = vld [vmem:[#allocation2 + $0x110] sm:$0xff] }
 0x193   : > { %v2005_v57 = vadd.f32 %v1973_v44, %v1934_v39  ;;  %v2006_v34 = vadd.f32 %v1974_v13, %v1935_v48  ;;  %v1487_v25 = vsel %vm4379_vm2, %v4273_v21, 0.0  ;;  %v1294_v20 = vmul.f32 %v3850_v6, %v1225_v3 }
 0x194   : > { %v1395_v19 = vmul.f32 %v3866_v45, %v4375_v9  ;;  %v1524_v63 = vmul.f32 %v3826_v52, %v1487_v25  ;;  %v1593_v54 = vsel %vm4346_vm0, %v1561_v2, 0.0  ;;  %v1660_v36 = vadd.f32 %v1628_v5, %v1557_v42 }
 0x195   : > { %v2108_v60 = vadd.f32 %v2076_v31, %v2005_v57  ;;  %v2109_v59 = vadd.f32 %v2077_v17, %v2006_v34  ;;  %v1629_v29 = vmul.f32 %v3960_v22, %v1225_v3  ;;  %v1904_v21 = vmul.f32 %v4047_v14, %v1225_v3 }
 0x196   : > { %v1556_v15 = vadd.f32 %v1524_v63, %v4282_v46  ;;  %v1868_v6 = vsel %vm4287_vm14, %v1561_v2, 0.0  ;;  %v1764_v52 = vsel %vm4379_vm2, %v4329_v33, 0.0  ;;  %v1731_v4 = vadd.f32 %v1699_v62, %v1660_v36 }
 0x197   : > { %v2147_v49 = vadd.f32 %v4114_v23, %v2108_v60  ;;  %v2148_v45 = vadd.f32 %v4114_v23, %v2109_v59  ;;  %v1630_v46 = vmul.f32 %v3960_v22, %v1593_v54  ;;  %v1905_v7 = vmul.f32 %v4047_v14, %v1868_v6  ;;  %v1562_v60 = vld [vmem:[#allocation2 + $0x108] sm:$0xff] }
 0x198   : > { %v1659_v42 = vadd.f32 %v4333_v58, %v1556_v15  ;;  %v743_v55 = vadd.s32 232, %v4666_v1  ;;  %v1834_v10 = vadd.f32 %v1802_v26, %v1731_v4  ;;  %v745_v53 = vadd.s32 248, %v4666_v1  ;;  %v1735_v58 = vld [vmem:[#allocation2 + $0x102] sm:$0xff]  ;;  %v1736_v59 = vld [vmem:[#allocation2 + $0x10a] sm:$0xff] }
 0x199   : > { %v2179_v32 = vmax.f32 %v2147_v49, 0.0  ;;  %v2180_v11 = vmax.f32 %v2148_v45, 0.0  ;;  %v1801_v50 = vmul.f32 %v4036_v28, %v1764_v52  ;;  %v1975_v30 = vmul.f32 %v4089_v51, %v4375_v9  ;;  %v2012_v49 = vld [vmem:[#allocation2 + $0x112] sm:$0xff]  ;;  %v1665_v4 = vld [vmem:[#allocation2 + $0x109] sm:$0xff] }
 0x19a   : > { %v1730_v38 = vadd.f32 %v4336_v43, %v1659_v42  ;;  %v953_v0 = vand.u32 15, %v743_v55  ;;  %v2041_v37 = vsel %vm4379_vm2, %v1459_v56, 0.0  ;;  %v1937_v18 = vadd.f32 %v1905_v7, %v1834_v10 }
 0x19b   : > { %3019 = vmatmul.mubr.msk.f32.gmra.mxu1 %vm673_vm1, %v2179_v32  ;;  %v1976_v44 = vmul.f32 %v4089_v51, %v1664_v41  ;;  %v967_v31 = vand.u32 15, %v745_v53  ;;  %v1701_v43 = vmul.f32 %v3999_v16, %v1664_v41  ;;  %v1662_v39 = vadd.f32 %v1630_v46, %v1559_v8  ;;  %v1941_v8 = vld [vmem:[#allocation2 + $0x111] sm:$0xff]  ;;  %v2013_v53 = vld [vmem:[#allocation2 + $0x11a] sm:$0xff] }
 0x19c   : > { %3021 = vmatprep.mubr.msk.f32.mxu1 %vm673_vm1, %v2180_v11  ;;  %v1833_v1 = vadd.f32 %v1801_v50, %v1730_v38  ;;  %vm4419_vm3 = vcmp.lt.s32.totalorder %v953_v0, 15  ;;  %v2079_v48 = vmul.f32 %v4060_v12, %v1735_v58  ;;  %v1870_v5 = vsel %vm4346_vm0, %v1838_v40, 0.0  ;;  %v1839_v32 = vld [vmem:[#allocation2 + $0x118] sm:$0xff] }
 0x19d   : > { %v2008_v47 = vadd.f32 %v1976_v44, %v1937_v18  ;;  %vm4424_vm4 = vcmp.lt.s32.totalorder %v967_v31, 15  ;;  %v1489_v3 = vsel %vm4419_vm3, %v4329_v33, 0.0  ;;  %v2078_v57 = vmul.f32 %v4060_v12, %v2041_v37 }
 0x19e   : > { %v1936_v62 = vadd.f32 %v1904_v21, %v1833_v1  ;;  %v1491_v26 = vsel %vm4424_vm4, %v1459_v56, 0.0  ;;  %v1526_v2 = vmul.f32 %v3051_v35, %v1489_v3  ;;  %v1804_v34 = vmul.f32 %v4036_v28, %v1735_v58  ;;  %v1942_v58 = vld [vmem:[#allocation2 + $0x119] sm:$0xff] }
 0x19f   : > { %v2111_v17 = vadd.f32 %v2079_v48, %v2008_v47  ;;  %v1528_v25 = vmul.f32 %v3051_v35, %v1491_v26  ;;  %v1766_v54 = vsel %vm4419_vm3, %v1459_v56, 0.0  ;;  %v1733_v36 = vadd.f32 %v1701_v43, %v1662_v39 }
 0x1a0   : > { %v2007_v33 = vadd.f32 %v1975_v30, %v1936_v62  ;;  %v1558_v63 = vadd.f32 %v1526_v2, %v4362_v24  ;;  %v1427_v15 = vadd.f32 %v1395_v19, %v1294_v20  ;;  %v1700_v61 = vmul.f32 %v3999_v16, %v4375_v9 }
 0x1a1   : > { %v2150_v21 = vadd.f32 %v4114_v23, %v2111_v17  ;;  %v1907_v6 = vmul.f32 %v4047_v14, %v1870_v5  ;;  %v1836_v42 = vadd.f32 %v1804_v34, %v1733_v36  ;;  %v1978_v24 = vmul.f32 %v4089_v51, %v1941_v8 }
 0x1a2   : > { %v2110_v45 = vadd.f32 %v2078_v57, %v2007_v33  ;;  %v1661_v52 = vadd.f32 %v1629_v29, %v1558_v63  ;;  %v1631_v46 = vmul.f32 %v3960_v22, %v1562_v60  ;;  %v1768_v56 = vsel %vm4424_vm4, %v1736_v59, 0.0  ;;  %v2553_v57 = vpop.permute.xlu0 %2552 }
 0x1a3   : > { %v1803_v20 = vmul.f32 %v4036_v28, %v1766_v54  ;;  %v1560_v19 = vadd.f32 %v1528_v25, %v1427_v15  ;;  %v1939_v7 = vadd.f32 %v1907_v6, %v1836_v42  ;;  %v2081_v55 = vmul.f32 %v4060_v12, %v2012_v49 }
 0x1a4   : > { %v2149_v9 = vadd.f32 %v4114_v23, %v2110_v45  ;;  %v1732_v41 = vadd.f32 %v1700_v61, %v1661_v52  ;;  %v2182_v29 = vmax.f32 %v2150_v21, 0.0  ;;  %v1702_v11 = vmul.f32 %v3999_v16, %v1665_v4 }
 0x1a5   : > { %v1663_v10 = vadd.f32 %v1631_v46, %v1560_v19  ;;  %v1906_v50 = vmul.f32 %v4047_v14, %v1562_v60  ;;  %v2010_v30 = vadd.f32 %v1978_v24, %v1939_v7  ;;  %v1805_v0 = vmul.f32 %v4036_v28, %v1768_v56  ;;  %v2557_v60 = vpop.permute.xlu1 %2556 }
 0x1a6   : > { %v2181_v38 = vmax.f32 %v2149_v9, 0.0  ;;  %v1835_v22 = vadd.f32 %v1803_v20, %v1732_v41  ;;  %v2043_v37 = vsel %vm4419_vm3, %v1736_v59, 0.0  ;;  %v1908_v44 = vmul.f32 %v4047_v14, %v1839_v32  ;;  %v2551_v33 = vpop.permute.xlu0 %2550 }
 0x1a7   : > { %v1734_v18 = vadd.f32 %v1702_v11, %v1663_v10  ;;  %v1977_v16 = vmul.f32 %v4089_v51, %v1665_v4  ;;  %v2113_v40 = vadd.f32 %v2081_v55, %v2010_v30  ;;  %v2045_v1 = vsel %vm4424_vm4, %v2013_v53, 0.0 }
 0x1a8   : > { %3022 = vmatmul.mubr.msk.f32.gmra.mxu1 %vm673_vm1, %v2181_v38  ;;  %v1938_v31 = vadd.f32 %v1906_v50, %v1835_v22  ;;  %v1979_v28 = vmul.f32 %v4089_v51, %v1942_v58  ;;  %v2080_v27 = vmul.f32 %v4060_v12, %v2043_v37  ;;  %v2082_v48 = vmul.f32 %v4060_v12, %v2045_v1  ;;  %v4477_v12 = vld [vmem:[%s4591_s6] ss:$0 sm:$0xff] }
 0x1a9   : > { %3024 = vmatprep.mubr.msk.f32.mxu1 %vm673_vm1, %v2182_v29  ;;  %v1837_v43 = vadd.f32 %v1805_v0, %v1734_v18  ;;  %v2152_v47 = vadd.f32 %v4114_v23, %v2113_v40  ;;  %vm2678_vm5 = vcmask 130048   ;;  %v2555_v21 = vpop.permute.xlu1 %2554 }
 0x1aa   : > { %v2009_v39 = vadd.f32 %v1977_v16, %v1938_v31  ;;  %v2559_v46 = vpop.permute.xlu0 %2558 }
 0x1ab   : > { %v1940_v14 = vadd.f32 %v1908_v44, %v1837_v43  ;;  %v2184_v13 = vmax.f32 %v2152_v47, 0.0 }
 0x1ac   : > { %v2112_v3 = vadd.f32 %v2080_v27, %v2009_v39 }
 0x1ad   : > { %v2011_v62 = vadd.f32 %v1979_v28, %v1940_v14  ;;  %v2561_v52 = vpop.permute.xlu1 %2560 }
 0x1ae   : > { %v2151_v26 = vadd.f32 %v4114_v23, %v2112_v3  ;;  %v2563_v32 = vpop.permute.xlu0 %2562 }
 0x1af   : > { %v2114_v35 = vadd.f32 %v2082_v48, %v2011_v62 }
 0x1b0   : > { %v2183_v2 = vmax.f32 %v2151_v26, 0.0 }
 0x1b1   : > { %v2153_v5 = vadd.f32 %v4114_v23, %v2114_v35  ;;  %v2565_v9 = vpop.permute.xlu1 %2564 }
 0x1b2   : > { %3025 = vmatmul.mubr.msk.f32.gmra.mxu1 %vm673_vm1, %v2183_v2  ;;  %v2567_v30 = vpop.permute.xlu0 %2566 }
 0x1b3   : > { %3027 = vmatprep.mubr.msk.f32.mxu1 %vm673_vm1, %v2184_v13  ;;  %v2185_v51 = vmax.f32 %v2153_v5, 0.0 }
 0x1b5   : > { %v2569_v53 = vpop.permute.xlu1 %2568 }
 0x1b6   : > { %3028 = vmatmul.mubr.msk.f32.gmra.mxu1 %vm673_vm1, %v2185_v51  ;;  %v2571_v40 = vpop.permute.xlu0 %2570 }
 0x1b9   : > { %v2573_v18 = vpop.permute.xlu1 %2572 }
 0x1ba   : > { %v2575_v48 = vpop.permute.xlu0 %2574 }
 0x1bd   : > { %v2577_v39 = vpop.permute.xlu1 %2576 }
 0x1be   : > { %v2579_v51 = vpop.permute.xlu0 %2578 }
 0x1c1   : > { %v2984_v34 = vpop.f32.mrf.mxu1  ;;  %v2581_v13 = vpop.permute.xlu1 %2580 }
 0x1c2   : > { %v2365_v17 = vadd.f32 %v2984_v34, %v4477_v12 }
 0x1c3   : > { %v2359_v23 = vpop.f32.mrf.mxu1 }
 0x1c4   : > { %v2647_v25 = vadd.f32 %v2553_v57, %v2365_v17  ;;  %v2360_v8 = vadd.f32 %v4477_v12, %v2359_v23 }
 0x1c5   : > { %v2585_v23 = vpop.permute.xlu1 %2584 }
 0x1c6   : > { %2680 = vst.msk [vmem:[%s4485_s9 + $0x8] sm:$0xff] %vm2678_vm5, %v2647_v25  ;;  %v2646_v63 = vadd.f32 %v2551_v33, %v2360_v8 }
 0x1c8   : > { %2679 = vst.msk [vmem:[%s4485_s9] sm:$0xff] %vm2678_vm5, %v2646_v63  ;;  %v2583_v63 = vpop.permute.xlu0 %2582 }
 0x1d1   : > { %v2987_v59 = vpop.f32.mrf.mxu1 }
 0x1d2   : > { %v2375_v54 = vadd.f32 %v2987_v59, %v4477_v12 }
 0x1d3   : > { %v2369_v36 = vpop.f32.mrf.mxu1 }
 0x1d4   : > { %v2649_v15 = vadd.f32 %v2557_v60, %v2375_v54  ;;  %v2370_v61 = vadd.f32 %v4477_v12, %v2369_v36  ;;  %v2589_v36 = vpop.permute.xlu1 %2588 }
 0x1d6   : > { %2682 = vst.msk [vmem:[%s4485_s9 + $0x18] sm:$0xff] %vm2678_vm5, %v2649_v15  ;;  %v2648_v6 = vadd.f32 %v2555_v21, %v2370_v61 }
 0x1d8   : > { %2681 = vst.msk [vmem:[%s4485_s9 + $0x10] sm:$0xff] %vm2678_vm5, %v2648_v6  ;;  %v2587_v6 = vpop.permute.xlu0 %2586 }
 0x1dc   : > { %v2990_v49 = vpop.f32.mrf.mxu1 }
 0x1dd   : > { %v2385_v45 = vadd.f32 %v2990_v49, %v4477_v12 }
 0x1de   : > { %v2379_v4 = vpop.f32.mrf.mxu1 }
 0x1df   : > { %v2651_v42 = vadd.f32 %v2561_v52, %v2385_v45  ;;  %v2380_v24 = vadd.f32 %v4477_v12, %v2379_v4  ;;  %v2593_v4 = vpop.permute.xlu1 %2592 }
 0x1e1   : > { %2684 = vst.msk [vmem:[%s4485_s9 + $0x28] sm:$0xff] %vm2678_vm5, %v2651_v42  ;;  %v2650_v56 = vadd.f32 %v2559_v46, %v2380_v24 }
 0x1e3   : > { %2683 = vst.msk [vmem:[%s4485_s9 + $0x20] sm:$0xff] %vm2678_vm5, %v2650_v56  ;;  %v2591_v56 = vpop.permute.xlu0 %2590 }
 0x1e9   : > { %v2993_v20 = vpop.f32.mrf.mxu1 }
 0x1ea   : > { %v2395_v19 = vadd.f32 %v2993_v20, %v4477_v12 }
 0x1eb   : > { %v2389_v41 = vpop.f32.mrf.mxu1 }
 0x1ec   : > { %v2653_v7 = vadd.f32 %v2565_v9, %v2395_v19  ;;  %v2390_v55 = vadd.f32 %v4477_v12, %v2389_v41  ;;  %v2597_v41 = vpop.permute.xlu1 %2596 }
 0x1ee   : > { %2686 = vst.msk [vmem:[%s4485_s9 + $0x38] sm:$0xff] %vm2678_vm5, %v2653_v7  ;;  %v2652_v29 = vadd.f32 %v2563_v32, %v2390_v55 }
 0x1f0   : > { %2685 = vst.msk [vmem:[%s4485_s9 + $0x30] sm:$0xff] %vm2678_vm5, %v2652_v29  ;;  %v2595_v29 = vpop.permute.xlu0 %2594 }
 0x1f6   : > { %v2996_v11 = vpop.f32.mrf.mxu1 }
 0x1f7   : > { %v2405_v10 = vadd.f32 %v2996_v11, %v4477_v12 }
 0x1f8   : > { %v2399_v38 = vpop.f32.mrf.mxu1 }
 0x1f9   : > { %v2655_v22 = vadd.f32 %v2569_v53, %v2405_v10  ;;  %v2400_v50 = vadd.f32 %v4477_v12, %v2399_v38  ;;  %v2601_v38 = vpop.permute.xlu1 %2600 }
 0x1fb   : > { %2688 = vst.msk [vmem:[%s4485_s9 + $0x48] sm:$0xff] %vm2678_vm5, %v2655_v22  ;;  %v2654_v58 = vadd.f32 %v2567_v30, %v2400_v50 }
 0x1fd   : > { %2687 = vst.msk [vmem:[%s4485_s9 + $0x40] sm:$0xff] %vm2678_vm5, %v2654_v58  ;;  %v2599_v58 = vpop.permute.xlu0 %2598 }
 0x204   : > { %v2999_v0 = vpop.f32.mrf.mxu1 }
 0x205   : > { %v2415_v37 = vadd.f32 %v2999_v0, %v4477_v12 }
 0x206   : > { %v2409_v44 = vpop.f32.mrf.mxu1 }
 0x207   : > { %v2657_v31 = vadd.f32 %v2573_v18, %v2415_v37  ;;  %v2410_v16 = vadd.f32 %v4477_v12, %v2409_v44  ;;  %v2605_v44 = vpop.permute.xlu1 %2604 }
 0x209   : > { %2690 = vst.msk [vmem:[%s4485_s9 + $0x58] sm:$0xff] %vm2678_vm5, %v2657_v31  ;;  %v2656_v1 = vadd.f32 %v2571_v40, %v2410_v16 }
 0x20b   : > { %2689 = vst.msk [vmem:[%s4485_s9 + $0x50] sm:$0xff] %vm2678_vm5, %v2656_v1  ;;  %v2603_v1 = vpop.permute.xlu0 %2602 }
 0x211   : > { %v3002_v43 = vpop.f32.mrf.mxu1 }
 0x212   : > { %v2425_v28 = vadd.f32 %v3002_v43, %v4477_v12 }
 0x213   : > { %v2419_v27 = vpop.f32.mrf.mxu1 }
 0x214   : > { %v2659_v47 = vadd.f32 %v2577_v39, %v2425_v28  ;;  %v2420_v14 = vadd.f32 %v4477_v12, %v2419_v27  ;;  %v2609_v28 = vpop.permute.xlu1 %2608 }
 0x216   : > { %2692 = vst.msk [vmem:[%s4485_s9 + $0x68] sm:$0xff] %vm2678_vm5, %v2659_v47  ;;  %v2658_v3 = vadd.f32 %v2575_v48, %v2420_v14  ;;  %v2607_v47 = vpop.permute.xlu0 %2606 }
 0x218   : > { %2691 = vst.msk [vmem:[%s4485_s9 + $0x60] sm:$0xff] %vm2678_vm5, %v2658_v3 }
 0x21e   : > { %v3005_v62 = vpop.f32.mrf.mxu1 }
 0x21f   : > { %v2435_v26 = vadd.f32 %v3005_v62, %v4477_v12 }
 0x220   : > { %v2429_v35 = vpop.f32.mrf.mxu1 }
 0x221   : > { %v2661_v2 = vadd.f32 %v2581_v13, %v2435_v26  ;;  %v2430_v5 = vadd.f32 %v4477_v12, %v2429_v35  ;;  %v2613_v35 = vpop.permute.xlu1 %2612 }
 0x223   : > { %2694 = vst.msk [vmem:[%s4485_s9 + $0x78] sm:$0xff] %vm2678_vm5, %v2661_v2  ;;  %v2660_v57 = vadd.f32 %v2579_v51, %v2430_v5 }
 0x225   : > { %2693 = vst.msk [vmem:[%s4485_s9 + $0x70] sm:$0xff] %vm2678_vm5, %v2660_v57  ;;  %v2611_v57 = vpop.permute.xlu0 %2610 }
 0x228   : > { %v3008_v34 = vpop.f32.mrf.mxu1 }
 0x229   : > { %v2445_v17 = vadd.f32 %v3008_v34, %v4477_v12 }
 0x22a   : > { %v2439_v25 = vpop.f32.mrf.mxu1 }
 0x22b   : > { %v2663_v8 = vadd.f32 %v2585_v23, %v2445_v17  ;;  %v2440_v33 = vadd.f32 %v4477_v12, %v2439_v25 }
 0x22d   : > { %2696 = vst.msk [vmem:[%s4485_s9 + $0x88] sm:$0xff] %vm2678_vm5, %v2663_v8  ;;  %v2662_v60 = vadd.f32 %v2583_v63, %v2440_v33 }
 0x22f   : > { %2695 = vst.msk [vmem:[%s4485_s9 + $0x80] sm:$0xff] %vm2678_vm5, %v2662_v60 }
 0x235   : > { %v3011_v59 = vpop.f32.mrf.mxu1 }
 0x236   : > { %v2455_v54 = vadd.f32 %v3011_v59, %v4477_v12 }
 0x237   : > { %v2449_v15 = vpop.f32.mrf.mxu1 }
 0x238   : > { %v2665_v61 = vadd.f32 %v2589_v36, %v2455_v54  ;;  %v2450_v21 = vadd.f32 %v4477_v12, %v2449_v15 }
 0x23a   : > { %2698 = vst.msk [vmem:[%s4485_s9 + $0x98] sm:$0xff] %vm2678_vm5, %v2665_v61  ;;  %v2664_v49 = vadd.f32 %v2587_v6, %v2450_v21 }
 0x23c   : > { %2697 = vst.msk [vmem:[%s4485_s9 + $0x90] sm:$0xff] %vm2678_vm5, %v2664_v49 }
 0x23f   : > { %v3014_v45 = vpop.f32.mrf.mxu1 }
 0x240   : > { %v2465_v52 = vadd.f32 %v3014_v45, %v4477_v12 }
 0x241   : > { %v2459_v42 = vpop.f32.mrf.mxu1 }
 0x242   : > { %v2667_v24 = vadd.f32 %v2593_v4, %v2465_v52  ;;  %v2460_v46 = vadd.f32 %v4477_v12, %v2459_v42 }
 0x244   : > { %2700 = vst.msk [vmem:[%s4485_s9 + $0xa8] sm:$0xff] %vm2678_vm5, %v2667_v24  ;;  %v2666_v20 = vadd.f32 %v2591_v56, %v2460_v46 }
 0x246   : > { %2699 = vst.msk [vmem:[%s4485_s9 + $0xa0] sm:$0xff] %vm2678_vm5, %v2666_v20 }
 0x24f   : > { %v3017_v19 = vpop.f32.mrf.mxu1 }
 0x250   : > { %v2475_v9 = vadd.f32 %v3017_v19, %v4477_v12 }
 0x251   : > { %v2469_v7 = vpop.f32.mrf.mxu1 }
 0x252   : > { %v2669_v55 = vadd.f32 %v2597_v41, %v2475_v9  ;;  %v2470_v32 = vadd.f32 %v4477_v12, %v2469_v7 }
 0x254   : > { %2702 = vst.msk [vmem:[%s4485_s9 + $0xb8] sm:$0xff] %vm2678_vm5, %v2669_v55  ;;  %v2668_v11 = vadd.f32 %v2595_v29, %v2470_v32 }
 0x256   : > { %2701 = vst.msk [vmem:[%s4485_s9 + $0xb0] sm:$0xff] %vm2678_vm5, %v2668_v11 }
 0x25b   : > { %v3020_v10 = vpop.f32.mrf.mxu1 }
 0x25c   : > { %v2485_v53 = vadd.f32 %v3020_v10, %v4477_v12 }
 0x25d   : > { %v2479_v22 = vpop.f32.mrf.mxu1 }
 0x25e   : > { %v2671_v50 = vadd.f32 %v2601_v38, %v2485_v53  ;;  %v2480_v30 = vadd.f32 %v4477_v12, %v2479_v22 }
 0x260   : > { %2704 = vst.msk [vmem:[%s4485_s9 + $0xc8] sm:$0xff] %vm2678_vm5, %v2671_v50  ;;  %v2670_v0 = vadd.f32 %v2599_v58, %v2480_v30 }
 0x262   : > { %2703 = vst.msk [vmem:[%s4485_s9 + $0xc0] sm:$0xff] %vm2678_vm5, %v2670_v0 }
 0x268   : > { %v3023_v37 = vpop.f32.mrf.mxu1 }
 0x269   : > { %v2495_v18 = vadd.f32 %v3023_v37, %v4477_v12 }
 0x26a   : > { %v2489_v31 = vpop.f32.mrf.mxu1 }
 0x26b   : > { %v2673_v16 = vadd.f32 %v2605_v44, %v2495_v18  ;;  %v2490_v40 = vadd.f32 %v4477_v12, %v2489_v31 }
 0x26d   : > { %2706 = vst.msk [vmem:[%s4485_s9 + $0xd8] sm:$0xff] %vm2678_vm5, %v2673_v16  ;;  %v2672_v43 = vadd.f32 %v2603_v1, %v2490_v40 }
 0x26f   : > { %2705 = vst.msk [vmem:[%s4485_s9 + $0xd0] sm:$0xff] %vm2678_vm5, %v2672_v43 }
 0x272   : > { %v3026_v39 = vpop.f32.mrf.mxu1 }
 0x273   : > { %v2505_v27 = vadd.f32 %v3026_v39, %v4477_v12 }
 0x274   : > { %v2499_v14 = vpop.f32.mrf.mxu1 }
 0x275   : > { %v2675_v48 = vadd.f32 %v2609_v28, %v2505_v27  ;;  %v2500_v3 = vadd.f32 %v4477_v12, %v2499_v14 }
 0x276   : > { %v3029_v62 = vpop.f32.mrf.mxu1 }
 0x277   : > { %2708 = vst.msk [vmem:[%s4485_s9 + $0xe8] sm:$0xff] %vm2678_vm5, %v2675_v48  ;;  %v2674_v26 = vadd.f32 %v2607_v47, %v2500_v3  ;;  %v2515_v13 = vadd.f32 %v3029_v62, %v4477_v12 }
 0x278   : > { %v2509_v2 = vpop.f32.mrf.mxu1 }
 0x279   : > { %2707 = vst.msk [vmem:[%s4485_s9 + $0xe0] sm:$0xff] %vm2678_vm5, %v2674_v26  ;;  %v2677_v5 = vadd.f32 %v2613_v35, %v2515_v13  ;;  %v2510_v51 = vadd.f32 %v4477_v12, %v2509_v2 }
 0x27b   : > { %2710 = vst.msk [vmem:[%s4485_s9 + $0xf8] sm:$0xff] %vm2678_vm5, %v2677_v5  ;;  %v2676_v34 = vadd.f32 %v2611_v57, %v2510_v51 }
 0x27d   : > { %2709 = vst.msk [vmem:[%s4485_s9 + $0xf0] sm:$0xff] %vm2678_vm5, %v2676_v34 }
 0x27e PF: > { %s17_s24 = sadd.s32 1, %s3058_s24  }
 0x27f   : > { %p14_p4 = scmp.ge.s32.totalorder %s17_s24, 4  }
 0x281   :  { %16 = sbr.rel (!%p14_p4) target bundleno = 1 (0x1), region = 78 }

</bundles_post_ra>
